<compile_context>
chip_gen: v6e
topology: v6e:2x2x1
jax: 0.10.0
libtpu: 0.0.40
codegen_flags: <defaults>
</compile_context>

<pallas_src>
import math
from functools import partial

import jax
import jax.numpy as jnp
import numpy as np
from jax.experimental import pallas as pl

# ----------------------- config (mirrors BaseTransformer __init__) ------------
DIM = 32
N_HEADS = 4
N_KV_HEADS = 2
HEAD_DIM = DIM // N_HEADS            # 8
N_LAYERS = 2
ROPE_THETA = 10000.0
MAX_SEQLEN = 16
MULTIPLE_OF = 32
NORM_EPS = 1e-5
# FeedForward hidden dim rule: hidden = 4*dim -> 2/3 -> round up to multiple_of
FFN_HIDDEN = MULTIPLE_OF * ((int(2 * (4 * DIM) / 3) + MULTIPLE_OF - 1) // MULTIPLE_OF)  # 96
HEADS_PER_GROUP = N_HEADS // N_KV_HEADS

B, S = 2, 8   # batch, sequence


# ----------------------------- fused Pallas kernel ----------------------------
def fused_transformer_kernel(x_ref, wqkv_ref, wo_ref, w13_ref, w2_ref,
                             attn_nw_ref, ffn_nw_ref,
                             cosq_ref, sinq_ref, cosk_ref, sink_ref, mask_ref,
                             out_ref, *, n_layers, n_heads, n_kv_heads, head_dim,
                             ffn_hidden, eps):
    x = x_ref[...]                                   # (M, D) f32 residual stream
    cosq = cosq_ref[...]                             # (M, H*hd)   (scale folded in)
    sinq = sinq_ref[...]
    cosk = cosk_ref[...]                             # (M, KV*hd)
    sink = sink_ref[...]
    mask = mask_ref[...]                             # (M, M) block-diagonal batch mask

    hpg = n_heads // n_kv_heads
    d_q = n_heads * head_dim                         # 32
    d_kv = n_kv_heads * head_dim                     # 16

    def rmsnorm(v, w):
        return v * jax.lax.rsqrt(jnp.mean(v * v, axis=-1, keepdims=True) + eps) * w

    for layer in range(n_layers):                    # static unroll (2 layers)
        # ------------------------ attention sub-block ------------------------
        xn = rmsnorm(x, attn_nw_ref[layer]).astype(jnp.bfloat16)
        # one fused projection: [Wq_perm | Wq_rot | Wk_perm | Wk_rot | Wv] -> (M, 112)
        proj = jnp.dot(xn, wqkv_ref[layer], preferred_element_type=jnp.float32)
        # element-wise RoPE (rotate-half form on the permuted layout)
        q = proj[:, 0:d_q] * cosq + proj[:, d_q:2 * d_q] * sinq                    # (M, 32)
        k = (proj[:, 2 * d_q:2 * d_q + d_kv] * cosk
             + proj[:, 2 * d_q + d_kv:2 * d_q + 2 * d_kv] * sink)                  # (M, 16)
        v = proj[:, 2 * d_q + 2 * d_kv:]                                           # (M, 16)

        heads = []
        for h in range(n_heads):                     # static unroll over heads
            g = h // hpg                             # GQA: KV head index (no repeat)
            qh = q[:, h * head_dim:(h + 1) * head_dim]          # (M, hd)
            kh = k[:, g * head_dim:(g + 1) * head_dim]          # (M, hd)
            vh = v[:, g * head_dim:(g + 1) * head_dim]          # (M, hd)
            # both batches at once; cross-batch keys masked out
            s = jax.lax.dot_general(qh, kh, (((1,), (1,)), ((), ())),
                                    preferred_element_type=jnp.float32) + mask     # (M, M)
            s = s - jnp.max(s, axis=-1, keepdims=True)
            p = jnp.exp(s)
            p = p * pl.reciprocal(jnp.sum(p, axis=-1, keepdims=True), approx=False)
            heads.append(jnp.dot(p, vh, preferred_element_type=jnp.float32))       # (M, hd)

        o = jnp.concatenate(heads, axis=-1).astype(jnp.bfloat16)                   # (M, 32)
        x = x + jnp.dot(o, wo_ref[layer], preferred_element_type=jnp.float32)

        # --------------------------- FFN sub-block ---------------------------
        xn2 = rmsnorm(x, ffn_nw_ref[layer]).astype(jnp.bfloat16)
        h13 = jnp.dot(xn2, w13_ref[layer], preferred_element_type=jnp.float32)     # (M, 192)
        h1 = h13[:, :ffn_hidden]
        h3 = h13[:, ffn_hidden:]
        gate = (h1 * jax.nn.sigmoid(h1)) * h3                                      # SiLU gate, f32
        x = x + jnp.dot(gate.astype(jnp.bfloat16), w2_ref[layer],
                        preferred_element_type=jnp.float32)

    out_ref[...] = x


@jax.jit
def base_transformer_forward(h, packed, cosq, sinq, cosk, sink, mask):
    Bb, Ss, Dd = h.shape
    x2d = h.reshape(Bb * Ss, Dd)
    out = pl.pallas_call(
        partial(fused_transformer_kernel,
                n_layers=N_LAYERS, n_heads=N_HEADS, n_kv_heads=N_KV_HEADS,
                head_dim=HEAD_DIM, ffn_hidden=FFN_HIDDEN, eps=NORM_EPS),
        out_shape=jax.ShapeDtypeStruct((Bb * Ss, Dd), jnp.float32),
    )(x2d, packed["wqkv"], packed["wo"], packed["w13"], packed["w2"],
      packed["attn_nw"], packed["ffn_nw"], cosq, sinq, cosk, sink, mask)
    return out.reshape(Bb, Ss, Dd)


# ----------------------------- host-side weight packing -----------------------
def _deinterleave_perm(n_heads, head_dim):
    """Per-head column order [a0..a_{hd/2-1}, b0..b_{hd/2-1}] (a=even, b=odd)."""
    half = head_dim // 2
    idx = []
    for h in range(n_heads):
        base = h * head_dim
        idx += [base + 2 * j for j in range(half)]
        idx += [base + 2 * j + 1 for j in range(half)]
    return np.asarray(idx)


def _rotate_half_perm(n_heads, head_dim):
    """Columns such that proj gives [b0..b_{hd/2-1}, a0..a_{hd/2-1}] per head."""
    half = head_dim // 2
    idx = []
    for h in range(n_heads):
        base = h * head_dim
        idx += [base + 2 * j + 1 for j in range(half)]
        idx += [base + 2 * j for j in range(half)]
    return np.asarray(idx)


def pack_params(params):
    """Build layer-stacked, bf16, fusion-friendly weights for the kernel."""
    pa_q = _deinterleave_perm(N_HEADS, HEAD_DIM)
    pr_q = _rotate_half_perm(N_HEADS, HEAD_DIM)
    pa_k = _deinterleave_perm(N_KV_HEADS, HEAD_DIM)
    pr_k = _rotate_half_perm(N_KV_HEADS, HEAD_DIM)
    wqkv, wo, w13, w2, anw, fnw = [], [], [], [], [], []
    for lp in params:
        wq, wk, wv = lp["wq"], lp["wk"], lp["wv"]
        wqkv.append(jnp.concatenate(
            [wq[:, pa_q], wq[:, pr_q], wk[:, pa_k], wk[:, pr_k], wv], axis=1))  # (D, 112)
        wo.append(lp["wo"])
        w13.append(jnp.concatenate([lp["w1"], lp["w3"]], axis=1))               # (D, 192)
        w2.append(lp["w2"])
        anw.append(lp["attn_norm_w"])
        fnw.append(lp["ffn_norm_w"])
    bf = lambda xs: jnp.stack(xs).astype(jnp.bfloat16)
    return dict(wqkv=bf(wqkv), wo=bf(wo), w13=bf(w13), w2=bf(w2),
                attn_nw=jnp.stack(anw), ffn_nw=jnp.stack(fnw))


# ----------------------------- RoPE tables & batch mask ------------------------
def rope_tables(head_dim, max_seqlen, theta, seqlen, batch):
    half = head_dim // 2
    freqs = 1.0 / theta ** (np.arange(0, head_dim, 2)[:half].astype(np.float32) / head_dim)
    t = np.arange(max_seqlen, dtype=np.float32)
    ang = np.outer(t, freqs).astype(np.float32)                  # built for max_seqlen
    cos = np.cos(ang)[:seqlen]                                   # sliced to seq_len (S, hd/2)
    sin = np.sin(ang)[:seqlen]
    scale = 1.0 / math.sqrt(head_dim)
    cos_h = np.concatenate([cos, cos], axis=-1)                  # (S, hd) rotate-half layout
    sin_h = np.concatenate([-sin, sin], axis=-1)                 # signs baked in

    def expand(tab, n_heads):
        full = np.tile(tab, (1, n_heads))                        # (S, n_heads*hd)
        return np.tile(full, (batch, 1)).astype(np.float32)      # (B*S, n_heads*hd)

    cosq = expand(cos_h, N_HEADS) * scale                        # fold 1/sqrt(hd) into q
    sinq = expand(sin_h, N_HEADS) * scale
    cosk = expand(cos_h, N_KV_HEADS)
    sink = expand(sin_h, N_KV_HEADS)
    return (jnp.asarray(cos), jnp.asarray(sin),
            jnp.asarray(cosq), jnp.asarray(sinq),
            jnp.asarray(cosk), jnp.asarray(sink))


def batch_block_mask(batch, seqlen):
    ids = np.repeat(np.arange(batch), seqlen)
    m = np.where(ids[:, None] == ids[None, :], 0.0, -1e30).astype(np.float32)
    return jnp.asarray(m)


# ----------------------------- parameters -------------------------------------
def init_params(key):
    """Synthetic init following BaseTransformer.init_weights scaling.
    Linear weights stored (in_features, out_features) and pre-rounded to bf16
    (the kernel uses bf16 MXU operands with f32 accumulation)."""
    params = []
    for depth in range(N_LAYERS):
        depth_factor = (2 * (depth + 1)) ** 0.5
        std_in = DIM ** (-0.5) / depth_factor
        std_hid = FFN_HIDDEN ** (-0.5) / depth_factor
        ks = jax.random.split(jax.random.fold_in(key, depth), 7)

        def r(k, shape, std):
            w = jax.random.normal(k, shape, jnp.float32) * std
            return w.astype(jnp.bfloat16).astype(jnp.float32)

        params.append(dict(
            wq=r(ks[0], (DIM, N_HEADS * HEAD_DIM), std_in),
            wk=r(ks[1], (DIM, N_KV_HEADS * HEAD_DIM), std_in),
            wv=r(ks[2], (DIM, N_KV_HEADS * HEAD_DIM), std_in),
            wo=r(ks[3], (N_HEADS * HEAD_DIM, DIM), std_in),
            w1=r(ks[4], (DIM, FFN_HIDDEN), std_in),
            w3=r(ks[5], (DIM, FFN_HIDDEN), std_in),
            w2=r(ks[6], (FFN_HIDDEN, DIM), std_hid),
            attn_norm_w=jnp.ones((1, DIM), jnp.float32),
            ffn_norm_w=jnp.ones((1, DIM), jnp.float32),
        ))
    return params


# ----------------------------- pure-JAX reference ------------------------------
def _rmsnorm_ref(x, w, eps):
    return x * jax.lax.rsqrt(jnp.mean(x * x, axis=-1, keepdims=True) + eps) * w


def _rope_ref(x, cos, sin):
    xs = x.reshape(*x.shape[:-1], -1, 2)
    x0, x1 = xs[..., 0], xs[..., 1]
    c = cos[None, :, None, :]
    s = sin[None, :, None, :]
    o0 = x0 * c - x1 * s
    o1 = x0 * s + x1 * c
    return jnp.stack([o0, o1], axis=-1).reshape(x.shape)


def _bf16_round(x):
    return x.astype(jnp.bfloat16).astype(jnp.float32)


def forward_ref(h, params, cos, sin):
    """Original-layout reference; activations feeding matmuls are bf16-rounded to
    mirror the kernel's bf16 MXU operands (weights are already bf16-rounded)."""
    for lp in params:
        x = h
        xn = _bf16_round(_rmsnorm_ref(x, lp["attn_norm_w"].reshape(-1), NORM_EPS))
        q = (xn @ lp["wq"]).reshape(B, S, N_HEADS, HEAD_DIM)
        k = (xn @ lp["wk"]).reshape(B, S, N_KV_HEADS, HEAD_DIM)
        v = (xn @ lp["wv"]).reshape(B, S, N_KV_HEADS, HEAD_DIM)
        q = _rope_ref(q, cos, sin)
        k = _rope_ref(k, cos, sin)
        k = jnp.repeat(k, HEADS_PER_GROUP, axis=2)
        v = jnp.repeat(v, HEADS_PER_GROUP, axis=2)
        scores = jnp.einsum("bqhd,bkhd->bhqk", q, k) / math.sqrt(HEAD_DIM)
        p = jax.nn.softmax(scores, axis=-1)
        o = jnp.einsum("bhqk,bkhd->bqhd", p, v).reshape(B, S, N_HEADS * HEAD_DIM)
        x = x + _bf16_round(o) @ lp["wo"]
        xn2 = _bf16_round(_rmsnorm_ref(x, lp["ffn_norm_w"].reshape(-1), NORM_EPS))
        hh = jax.nn.silu(xn2 @ lp["w1"]) * (xn2 @ lp["w3"])
        h = x + _bf16_round(hh) @ lp["w2"]
    return h


# ----------------------------- main --------------------------------------------
if __name__ == "__main__":
    assert S <= MAX_SEQLEN, "sequence length exceeds precomputed RoPE table"

    key = jax.random.PRNGKey(0)
    pkey, xkey = jax.random.split(key)
    params = init_params(pkey)                 # original-layout weights (bf16-rounded, f32)
    packed = pack_params(params)               # permuted / fused / stacked bf16 weights
    h = jax.random.normal(xkey, (B, S, DIM), jnp.float32)

    cos, sin, cosq, sinq, cosk, sink = rope_tables(HEAD_DIM, MAX_SEQLEN, ROPE_THETA, S, B)
    mask = batch_block_mask(B, S)

    out = base_transformer_forward(h, packed, cosq, sinq, cosk, sink, mask)
    out = jax.block_until_ready(out)

    with jax.default_matmul_precision("highest"):
        ref = jax.block_until_ready(forward_ref(h, params, cos, sin))

    assert out.shape == (B, S, DIM)
    np.testing.assert_allclose(np.asarray(out), np.asarray(ref), atol=2e-3, rtol=2e-3)

    print("KERNEL_OK")
</pallas_src>

<mosaic_0001>
module attributes {stable_mosaic.version = 11 : i64} {
  func.func @fused_transformer_kernel(%arg0: memref<16x32xf32, #tpu.memory_space<vmem>>, %arg1: memref<2x32x112xbf16, #tpu.memory_space<vmem>>, %arg2: memref<2x32x32xbf16, #tpu.memory_space<vmem>>, %arg3: memref<2x32x192xbf16, #tpu.memory_space<vmem>>, %arg4: memref<2x96x32xbf16, #tpu.memory_space<vmem>>, %arg5: memref<2x1x32xf32, #tpu.memory_space<vmem>>, %arg6: memref<2x1x32xf32, #tpu.memory_space<vmem>>, %arg7: memref<16x32xf32, #tpu.memory_space<vmem>>, %arg8: memref<16x32xf32, #tpu.memory_space<vmem>>, %arg9: memref<16x16xf32, #tpu.memory_space<vmem>>, %arg10: memref<16x16xf32, #tpu.memory_space<vmem>>, %arg11: memref<16x16xf32, #tpu.memory_space<vmem>>, %arg12: memref<16x32xf32, #tpu.memory_space<vmem>>) attributes {dimension_semantics = [], scalar_prefetch = 0 : i64, scratch_operands = 0 : i64, tpu.core_type = #tpu.core_type<tc>} {
    %c0 = arith.constant 0 : index
    %c0_0 = arith.constant 0 : index
    %0 = vector.load %arg0[%c0, %c0_0] : memref<16x32xf32, #tpu.memory_space<vmem>>, vector<16x32xf32>
    %c0_1 = arith.constant 0 : index
    %c0_2 = arith.constant 0 : index
    %1 = vector.load %arg7[%c0_1, %c0_2] : memref<16x32xf32, #tpu.memory_space<vmem>>, vector<16x32xf32>
    %c0_3 = arith.constant 0 : index
    %c0_4 = arith.constant 0 : index
    %2 = vector.load %arg8[%c0_3, %c0_4] : memref<16x32xf32, #tpu.memory_space<vmem>>, vector<16x32xf32>
    %c0_5 = arith.constant 0 : index
    %c0_6 = arith.constant 0 : index
    %3 = vector.load %arg9[%c0_5, %c0_6] : memref<16x16xf32, #tpu.memory_space<vmem>>, vector<16x16xf32>
    %c0_7 = arith.constant 0 : index
    %c0_8 = arith.constant 0 : index
    %4 = vector.load %arg10[%c0_7, %c0_8] : memref<16x16xf32, #tpu.memory_space<vmem>>, vector<16x16xf32>
    %c0_9 = arith.constant 0 : index
    %c0_10 = arith.constant 0 : index
    %5 = vector.load %arg11[%c0_9, %c0_10] : memref<16x16xf32, #tpu.memory_space<vmem>>, vector<16x16xf32>
    %c0_11 = arith.constant 0 : index
    %c0_12 = arith.constant 0 : index
    %c0_13 = arith.constant 0 : index
    %6 = vector.load %arg5[%c0_11, %c0_12, %c0_13] : memref<2x1x32xf32, #tpu.memory_space<vmem>>, vector<1x1x32xf32>
    %7 = vector.shape_cast %6 : vector<1x1x32xf32> to vector<1x32xf32>
    %8 = arith.mulf %0, %0 : vector<16x32xf32>
    %cst = arith.constant dense<0.000000e+00> : vector<16xf32>
    %9 = vector.multi_reduction <add>, %8, %cst [1] : vector<16x32xf32> to vector<16xf32>
    %10 = vector.shape_cast %9 : vector<16xf32> to vector<16x1xf32>
    %cst_14 = arith.constant 3.200000e+01 : f32
    %11 = vector.broadcast %cst_14 : f32 to vector<16x1xf32>
    %12 = arith.divf %10, %11 : vector<16x1xf32>
    %cst_15 = arith.constant 9.99999974E-6 : f32
    %13 = vector.broadcast %cst_15 : f32 to vector<16x1xf32>
    %14 = arith.addf %12, %13 : vector<16x1xf32>
    %15 = math.rsqrt %14 : vector<16x1xf32>
    %16 = vector.broadcast %15 : vector<16x1xf32> to vector<16x32xf32>
    %17 = arith.mulf %0, %16 : vector<16x32xf32>
    %18 = vector.broadcast %7 : vector<1x32xf32> to vector<16x32xf32>
    %19 = arith.mulf %17, %18 : vector<16x32xf32>
    %20 = arith.truncf %19 : vector<16x32xf32> to vector<16x32xbf16>
    %c0_16 = arith.constant 0 : index
    %c0_17 = arith.constant 0 : index
    %c0_18 = arith.constant 0 : index
    %21 = vector.load %arg1[%c0_16, %c0_17, %c0_18] : memref<2x32x112xbf16, #tpu.memory_space<vmem>>, vector<1x32x112xbf16>
    %22 = vector.shape_cast %21 : vector<1x32x112xbf16> to vector<32x112xbf16>
    %cst_19 = arith.constant dense<0.000000e+00> : vector<16x112xf32>
    %23 = tpu.matmul %20, %22, %cst_19 {dimension_numbers = #tpu.dot_dimension_numbers<[1], [0], [0], [1], [0, 0, 1, 1], [], []>} : vector<16x32xbf16>, vector<32x112xbf16>, vector<16x112xf32> -> vector<16x112xf32>
    %24 = vector.extract_strided_slice %23 {offsets = [0, 0], sizes = [16, 32], strides = [1, 1]} : vector<16x112xf32> to vector<16x32xf32>
    %25 = arith.mulf %24, %1 : vector<16x32xf32>
    %26 = vector.extract_strided_slice %23 {offsets = [0, 32], sizes = [16, 32], strides = [1, 1]} : vector<16x112xf32> to vector<16x32xf32>
    %27 = arith.mulf %26, %2 : vector<16x32xf32>
    %28 = arith.addf %25, %27 : vector<16x32xf32>
    %29 = vector.extract_strided_slice %23 {offsets = [0, 64], sizes = [16, 16], strides = [1, 1]} : vector<16x112xf32> to vector<16x16xf32>
    %30 = arith.mulf %29, %3 : vector<16x16xf32>
    %31 = vector.extract_strided_slice %23 {offsets = [0, 80], sizes = [16, 16], strides = [1, 1]} : vector<16x112xf32> to vector<16x16xf32>
    %32 = arith.mulf %31, %4 : vector<16x16xf32>
    %33 = arith.addf %30, %32 : vector<16x16xf32>
    %34 = vector.extract_strided_slice %23 {offsets = [0, 96], sizes = [16, 16], strides = [1, 1]} : vector<16x112xf32> to vector<16x16xf32>
    %35 = vector.extract_strided_slice %28 {offsets = [0, 0], sizes = [16, 8], strides = [1, 1]} : vector<16x32xf32> to vector<16x8xf32>
    %36 = vector.extract_strided_slice %33 {offsets = [0, 0], sizes = [16, 8], strides = [1, 1]} : vector<16x16xf32> to vector<16x8xf32>
    %37 = vector.extract_strided_slice %34 {offsets = [0, 0], sizes = [16, 8], strides = [1, 1]} : vector<16x16xf32> to vector<16x8xf32>
    %cst_20 = arith.constant dense<0.000000e+00> : vector<16x16xf32>
    %38 = tpu.matmul %35, %36, %cst_20 {dimension_numbers = #tpu.dot_dimension_numbers<[1], [1], [0], [0], [0, 0, 1, 0], [], []>} : vector<16x8xf32>, vector<16x8xf32>, vector<16x16xf32> -> vector<16x16xf32>
    %39 = arith.addf %38, %5 : vector<16x16xf32>
    %cst_21 = arith.constant dense<0xFF800000> : vector<16xf32>
    %40 = vector.multi_reduction <maximumf>, %39, %cst_21 [1] : vector<16x16xf32> to vector<16xf32>
    %41 = vector.shape_cast %40 : vector<16xf32> to vector<16x1xf32>
    %42 = vector.broadcast %41 : vector<16x1xf32> to vector<16x16xf32>
    %43 = arith.subf %39, %42 : vector<16x16xf32>
    %44 = math.exp %43 : vector<16x16xf32>
    %cst_22 = arith.constant dense<0.000000e+00> : vector<16xf32>
    %45 = vector.multi_reduction <add>, %44, %cst_22 [1] : vector<16x16xf32> to vector<16xf32>
    %46 = vector.shape_cast %45 : vector<16xf32> to vector<16x1xf32>
    %47 = tpu.reciprocal %46 : vector<16x1xf32> -> vector<16x1xf32>
    %48 = vector.broadcast %47 : vector<16x1xf32> to vector<16x16xf32>
    %49 = arith.mulf %44, %48 : vector<16x16xf32>
    %cst_23 = arith.constant dense<0.000000e+00> : vector<16x8xf32>
    %50 = tpu.matmul %49, %37, %cst_23 {dimension_numbers = #tpu.dot_dimension_numbers<[1], [0], [0], [1], [0, 0, 1, 1], [], []>} : vector<16x16xf32>, vector<16x8xf32>, vector<16x8xf32> -> vector<16x8xf32>
    %51 = vector.extract_strided_slice %28 {offsets = [0, 8], sizes = [16, 8], strides = [1, 1]} : vector<16x32xf32> to vector<16x8xf32>
    %52 = vector.extract_strided_slice %33 {offsets = [0, 0], sizes = [16, 8], strides = [1, 1]} : vector<16x16xf32> to vector<16x8xf32>
    %53 = vector.extract_strided_slice %34 {offsets = [0, 0], sizes = [16, 8], strides = [1, 1]} : vector<16x16xf32> to vector<16x8xf32>
    %cst_24 = arith.constant dense<0.000000e+00> : vector<16x16xf32>
    %54 = tpu.matmul %51, %52, %cst_24 {dimension_numbers = #tpu.dot_dimension_numbers<[1], [1], [0], [0], [0, 0, 1, 0], [], []>} : vector<16x8xf32>, vector<16x8xf32>, vector<16x16xf32> -> vector<16x16xf32>
    %55 = arith.addf %54, %5 : vector<16x16xf32>
    %cst_25 = arith.constant dense<0xFF800000> : vector<16xf32>
    %56 = vector.multi_reduction <maximumf>, %55, %cst_25 [1] : vector<16x16xf32> to vector<16xf32>
    %57 = vector.shape_cast %56 : vector<16xf32> to vector<16x1xf32>
    %58 = vector.broadcast %57 : vector<16x1xf32> to vector<16x16xf32>
    %59 = arith.subf %55, %58 : vector<16x16xf32>
    %60 = math.exp %59 : vector<16x16xf32>
    %cst_26 = arith.constant dense<0.000000e+00> : vector<16xf32>
    %61 = vector.multi_reduction <add>, %60, %cst_26 [1] : vector<16x16xf32> to vector<16xf32>
    %62 = vector.shape_cast %61 : vector<16xf32> to vector<16x1xf32>
    %63 = tpu.reciprocal %62 : vector<16x1xf32> -> vector<16x1xf32>
    %64 = vector.broadcast %63 : vector<16x1xf32> to vector<16x16xf32>
    %65 = arith.mulf %60, %64 : vector<16x16xf32>
    %cst_27 = arith.constant dense<0.000000e+00> : vector<16x8xf32>
    %66 = tpu.matmul %65, %53, %cst_27 {dimension_numbers = #tpu.dot_dimension_numbers<[1], [0], [0], [1], [0, 0, 1, 1], [], []>} : vector<16x16xf32>, vector<16x8xf32>, vector<16x8xf32> -> vector<16x8xf32>
    %67 = vector.extract_strided_slice %28 {offsets = [0, 16], sizes = [16, 8], strides = [1, 1]} : vector<16x32xf32> to vector<16x8xf32>
    %68 = vector.extract_strided_slice %33 {offsets = [0, 8], sizes = [16, 8], strides = [1, 1]} : vector<16x16xf32> to vector<16x8xf32>
    %69 = vector.extract_strided_slice %34 {offsets = [0, 8], sizes = [16, 8], strides = [1, 1]} : vector<16x16xf32> to vector<16x8xf32>
    %cst_28 = arith.constant dense<0.000000e+00> : vector<16x16xf32>
    %70 = tpu.matmul %67, %68, %cst_28 {dimension_numbers = #tpu.dot_dimension_numbers<[1], [1], [0], [0], [0, 0, 1, 0], [], []>} : vector<16x8xf32>, vector<16x8xf32>, vector<16x16xf32> -> vector<16x16xf32>
    %71 = arith.addf %70, %5 : vector<16x16xf32>
    %cst_29 = arith.constant dense<0xFF800000> : vector<16xf32>
    %72 = vector.multi_reduction <maximumf>, %71, %cst_29 [1] : vector<16x16xf32> to vector<16xf32>
    %73 = vector.shape_cast %72 : vector<16xf32> to vector<16x1xf32>
    %74 = vector.broadcast %73 : vector<16x1xf32> to vector<16x16xf32>
    %75 = arith.subf %71, %74 : vector<16x16xf32>
    %76 = math.exp %75 : vector<16x16xf32>
    %cst_30 = arith.constant dense<0.000000e+00> : vector<16xf32>
    %77 = vector.multi_reduction <add>, %76, %cst_30 [1] : vector<16x16xf32> to vector<16xf32>
    %78 = vector.shape_cast %77 : vector<16xf32> to vector<16x1xf32>
    %79 = tpu.reciprocal %78 : vector<16x1xf32> -> vector<16x1xf32>
    %80 = vector.broadcast %79 : vector<16x1xf32> to vector<16x16xf32>
    %81 = arith.mulf %76, %80 : vector<16x16xf32>
    %cst_31 = arith.constant dense<0.000000e+00> : vector<16x8xf32>
    %82 = tpu.matmul %81, %69, %cst_31 {dimension_numbers = #tpu.dot_dimension_numbers<[1], [0], [0], [1], [0, 0, 1, 1], [], []>} : vector<16x16xf32>, vector<16x8xf32>, vector<16x8xf32> -> vector<16x8xf32>
    %83 = vector.extract_strided_slice %28 {offsets = [0, 24], sizes = [16, 8], strides = [1, 1]} : vector<16x32xf32> to vector<16x8xf32>
    %84 = vector.extract_strided_slice %33 {offsets = [0, 8], sizes = [16, 8], strides = [1, 1]} : vector<16x16xf32> to vector<16x8xf32>
    %85 = vector.extract_strided_slice %34 {offsets = [0, 8], sizes = [16, 8], strides = [1, 1]} : vector<16x16xf32> to vector<16x8xf32>
    %cst_32 = arith.constant dense<0.000000e+00> : vector<16x16xf32>
    %86 = tpu.matmul %83, %84, %cst_32 {dimension_numbers = #tpu.dot_dimension_numbers<[1], [1], [0], [0], [0, 0, 1, 0], [], []>} : vector<16x8xf32>, vector<16x8xf32>, vector<16x16xf32> -> vector<16x16xf32>
    %87 = arith.addf %86, %5 : vector<16x16xf32>
    %cst_33 = arith.constant dense<0xFF800000> : vector<16xf32>
    %88 = vector.multi_reduction <maximumf>, %87, %cst_33 [1] : vector<16x16xf32> to vector<16xf32>
    %89 = vector.shape_cast %88 : vector<16xf32> to vector<16x1xf32>
    %90 = vector.broadcast %89 : vector<16x1xf32> to vector<16x16xf32>
    %91 = arith.subf %87, %90 : vector<16x16xf32>
    %92 = math.exp %91 : vector<16x16xf32>
    %cst_34 = arith.constant dense<0.000000e+00> : vector<16xf32>
    %93 = vector.multi_reduction <add>, %92, %cst_34 [1] : vector<16x16xf32> to vector<16xf32>
    %94 = vector.shape_cast %93 : vector<16xf32> to vector<16x1xf32>
    %95 = tpu.reciprocal %94 : vector<16x1xf32> -> vector<16x1xf32>
    %96 = vector.broadcast %95 : vector<16x1xf32> to vector<16x16xf32>
    %97 = arith.mulf %92, %96 : vector<16x16xf32>
    %cst_35 = arith.constant dense<0.000000e+00> : vector<16x8xf32>
    %98 = tpu.matmul %97, %85, %cst_35 {dimension_numbers = #tpu.dot_dimension_numbers<[1], [0], [0], [1], [0, 0, 1, 1], [], []>} : vector<16x16xf32>, vector<16x8xf32>, vector<16x8xf32> -> vector<16x8xf32>
    %99 = tpu.concatenate %50, %66, %82, %98 in 1 : vector<16x8xf32>, vector<16x8xf32>, vector<16x8xf32>, vector<16x8xf32> -> vector<16x32xf32>
    %100 = arith.truncf %99 : vector<16x32xf32> to vector<16x32xbf16>
    %c0_36 = arith.constant 0 : index
    %c0_37 = arith.constant 0 : index
    %c0_38 = arith.constant 0 : index
    %101 = vector.load %arg2[%c0_36, %c0_37, %c0_38] : memref<2x32x32xbf16, #tpu.memory_space<vmem>>, vector<1x32x32xbf16>
    %102 = vector.shape_cast %101 : vector<1x32x32xbf16> to vector<32x32xbf16>
    %cst_39 = arith.constant dense<0.000000e+00> : vector<16x32xf32>
    %103 = tpu.matmul %100, %102, %cst_39 {dimension_numbers = #tpu.dot_dimension_numbers<[1], [0], [0], [1], [0, 0, 1, 1], [], []>} : vector<16x32xbf16>, vector<32x32xbf16>, vector<16x32xf32> -> vector<16x32xf32>
    %104 = arith.addf %0, %103 : vector<16x32xf32>
    %c0_40 = arith.constant 0 : index
    %c0_41 = arith.constant 0 : index
    %c0_42 = arith.constant 0 : index
    %105 = vector.load %arg6[%c0_40, %c0_41, %c0_42] : memref<2x1x32xf32, #tpu.memory_space<vmem>>, vector<1x1x32xf32>
    %106 = vector.shape_cast %105 : vector<1x1x32xf32> to vector<1x32xf32>
    %107 = arith.mulf %104, %104 : vector<16x32xf32>
    %cst_43 = arith.constant dense<0.000000e+00> : vector<16xf32>
    %108 = vector.multi_reduction <add>, %107, %cst_43 [1] : vector<16x32xf32> to vector<16xf32>
    %109 = vector.shape_cast %108 : vector<16xf32> to vector<16x1xf32>
    %cst_44 = arith.constant 3.200000e+01 : f32
    %110 = vector.broadcast %cst_44 : f32 to vector<16x1xf32>
    %111 = arith.divf %109, %110 : vector<16x1xf32>
    %cst_45 = arith.constant 9.99999974E-6 : f32
    %112 = vector.broadcast %cst_45 : f32 to vector<16x1xf32>
    %113 = arith.addf %111, %112 : vector<16x1xf32>
    %114 = math.rsqrt %113 : vector<16x1xf32>
    %115 = vector.broadcast %114 : vector<16x1xf32> to vector<16x32xf32>
    %116 = arith.mulf %104, %115 : vector<16x32xf32>
    %117 = vector.broadcast %106 : vector<1x32xf32> to vector<16x32xf32>
    %118 = arith.mulf %116, %117 : vector<16x32xf32>
    %119 = arith.truncf %118 : vector<16x32xf32> to vector<16x32xbf16>
    %c0_46 = arith.constant 0 : index
    %c0_47 = arith.constant 0 : index
    %c0_48 = arith.constant 0 : index
    %120 = vector.load %arg3[%c0_46, %c0_47, %c0_48] : memref<2x32x192xbf16, #tpu.memory_space<vmem>>, vector<1x32x192xbf16>
    %121 = vector.shape_cast %120 : vector<1x32x192xbf16> to vector<32x192xbf16>
    %cst_49 = arith.constant dense<0.000000e+00> : vector<16x192xf32>
    %122 = tpu.matmul %119, %121, %cst_49 {dimension_numbers = #tpu.dot_dimension_numbers<[1], [0], [0], [1], [0, 0, 1, 1], [], []>} : vector<16x32xbf16>, vector<32x192xbf16>, vector<16x192xf32> -> vector<16x192xf32>
    %123 = vector.extract_strided_slice %122 {offsets = [0, 0], sizes = [16, 96], strides = [1, 1]} : vector<16x192xf32> to vector<16x96xf32>
    %124 = vector.extract_strided_slice %122 {offsets = [0, 96], sizes = [16, 96], strides = [1, 1]} : vector<16x192xf32> to vector<16x96xf32>
    %125 = arith.negf %123 : vector<16x96xf32>
    %126 = math.exp %125 : vector<16x96xf32>
    %cst_50 = arith.constant 1.000000e+00 : f32
    %127 = vector.broadcast %cst_50 : f32 to vector<16x96xf32>
    %128 = arith.addf %127, %126 : vector<16x96xf32>
    %129 = arith.divf %127, %128 : vector<16x96xf32>
    %130 = arith.mulf %123, %129 : vector<16x96xf32>
    %131 = arith.mulf %130, %124 : vector<16x96xf32>
    %132 = arith.truncf %131 : vector<16x96xf32> to vector<16x96xbf16>
    %c0_51 = arith.constant 0 : index
    %c0_52 = arith.constant 0 : index
    %c0_53 = arith.constant 0 : index
    %133 = vector.load %arg4[%c0_51, %c0_52, %c0_53] : memref<2x96x32xbf16, #tpu.memory_space<vmem>>, vector<1x96x32xbf16>
    %134 = vector.shape_cast %133 : vector<1x96x32xbf16> to vector<96x32xbf16>
    %cst_54 = arith.constant dense<0.000000e+00> : vector<16x32xf32>
    %135 = tpu.matmul %132, %134, %cst_54 {dimension_numbers = #tpu.dot_dimension_numbers<[1], [0], [0], [1], [0, 0, 1, 1], [], []>} : vector<16x96xbf16>, vector<96x32xbf16>, vector<16x32xf32> -> vector<16x32xf32>
    %136 = arith.addf %104, %135 : vector<16x32xf32>
    %c1 = arith.constant 1 : index
    %c0_55 = arith.constant 0 : index
    %c0_56 = arith.constant 0 : index
    %137 = vector.load %arg5[%c1, %c0_55, %c0_56] : memref<2x1x32xf32, #tpu.memory_space<vmem>>, vector<1x1x32xf32>
    %138 = vector.shape_cast %137 : vector<1x1x32xf32> to vector<1x32xf32>
    %139 = arith.mulf %136, %136 : vector<16x32xf32>
    %cst_57 = arith.constant dense<0.000000e+00> : vector<16xf32>
    %140 = vector.multi_reduction <add>, %139, %cst_57 [1] : vector<16x32xf32> to vector<16xf32>
    %141 = vector.shape_cast %140 : vector<16xf32> to vector<16x1xf32>
    %cst_58 = arith.constant 3.200000e+01 : f32
    %142 = vector.broadcast %cst_58 : f32 to vector<16x1xf32>
    %143 = arith.divf %141, %142 : vector<16x1xf32>
    %cst_59 = arith.constant 9.99999974E-6 : f32
    %144 = vector.broadcast %cst_59 : f32 to vector<16x1xf32>
    %145 = arith.addf %143, %144 : vector<16x1xf32>
    %146 = math.rsqrt %145 : vector<16x1xf32>
    %147 = vector.broadcast %146 : vector<16x1xf32> to vector<16x32xf32>
    %148 = arith.mulf %136, %147 : vector<16x32xf32>
    %149 = vector.broadcast %138 : vector<1x32xf32> to vector<16x32xf32>
    %150 = arith.mulf %148, %149 : vector<16x32xf32>
    %151 = arith.truncf %150 : vector<16x32xf32> to vector<16x32xbf16>
    %c1_60 = arith.constant 1 : index
    %c0_61 = arith.constant 0 : index
    %c0_62 = arith.constant 0 : index
    %152 = vector.load %arg1[%c1_60, %c0_61, %c0_62] : memref<2x32x112xbf16, #tpu.memory_space<vmem>>, vector<1x32x112xbf16>
    %153 = vector.shape_cast %152 : vector<1x32x112xbf16> to vector<32x112xbf16>
    %cst_63 = arith.constant dense<0.000000e+00> : vector<16x112xf32>
    %154 = tpu.matmul %151, %153, %cst_63 {dimension_numbers = #tpu.dot_dimension_numbers<[1], [0], [0], [1], [0, 0, 1, 1], [], []>} : vector<16x32xbf16>, vector<32x112xbf16>, vector<16x112xf32> -> vector<16x112xf32>
    %155 = vector.extract_strided_slice %154 {offsets = [0, 0], sizes = [16, 32], strides = [1, 1]} : vector<16x112xf32> to vector<16x32xf32>
    %156 = arith.mulf %155, %1 : vector<16x32xf32>
    %157 = vector.extract_strided_slice %154 {offsets = [0, 32], sizes = [16, 32], strides = [1, 1]} : vector<16x112xf32> to vector<16x32xf32>
    %158 = arith.mulf %157, %2 : vector<16x32xf32>
    %159 = arith.addf %156, %158 : vector<16x32xf32>
    %160 = vector.extract_strided_slice %154 {offsets = [0, 64], sizes = [16, 16], strides = [1, 1]} : vector<16x112xf32> to vector<16x16xf32>
    %161 = arith.mulf %160, %3 : vector<16x16xf32>
    %162 = vector.extract_strided_slice %154 {offsets = [0, 80], sizes = [16, 16], strides = [1, 1]} : vector<16x112xf32> to vector<16x16xf32>
    %163 = arith.mulf %162, %4 : vector<16x16xf32>
    %164 = arith.addf %161, %163 : vector<16x16xf32>
    %165 = vector.extract_strided_slice %154 {offsets = [0, 96], sizes = [16, 16], strides = [1, 1]} : vector<16x112xf32> to vector<16x16xf32>
    %166 = vector.extract_strided_slice %159 {offsets = [0, 0], sizes = [16, 8], strides = [1, 1]} : vector<16x32xf32> to vector<16x8xf32>
    %167 = vector.extract_strided_slice %164 {offsets = [0, 0], sizes = [16, 8], strides = [1, 1]} : vector<16x16xf32> to vector<16x8xf32>
    %168 = vector.extract_strided_slice %165 {offsets = [0, 0], sizes = [16, 8], strides = [1, 1]} : vector<16x16xf32> to vector<16x8xf32>
    %cst_64 = arith.constant dense<0.000000e+00> : vector<16x16xf32>
    %169 = tpu.matmul %166, %167, %cst_64 {dimension_numbers = #tpu.dot_dimension_numbers<[1], [1], [0], [0], [0, 0, 1, 0], [], []>} : vector<16x8xf32>, vector<16x8xf32>, vector<16x16xf32> -> vector<16x16xf32>
    %170 = arith.addf %169, %5 : vector<16x16xf32>
    %cst_65 = arith.constant dense<0xFF800000> : vector<16xf32>
    %171 = vector.multi_reduction <maximumf>, %170, %cst_65 [1] : vector<16x16xf32> to vector<16xf32>
    %172 = vector.shape_cast %171 : vector<16xf32> to vector<16x1xf32>
    %173 = vector.broadcast %172 : vector<16x1xf32> to vector<16x16xf32>
    %174 = arith.subf %170, %173 : vector<16x16xf32>
    %175 = math.exp %174 : vector<16x16xf32>
    %cst_66 = arith.constant dense<0.000000e+00> : vector<16xf32>
    %176 = vector.multi_reduction <add>, %175, %cst_66 [1] : vector<16x16xf32> to vector<16xf32>
    %177 = vector.shape_cast %176 : vector<16xf32> to vector<16x1xf32>
    %178 = tpu.reciprocal %177 : vector<16x1xf32> -> vector<16x1xf32>
    %179 = vector.broadcast %178 : vector<16x1xf32> to vector<16x16xf32>
    %180 = arith.mulf %175, %179 : vector<16x16xf32>
    %cst_67 = arith.constant dense<0.000000e+00> : vector<16x8xf32>
    %181 = tpu.matmul %180, %168, %cst_67 {dimension_numbers = #tpu.dot_dimension_numbers<[1], [0], [0], [1], [0, 0, 1, 1], [], []>} : vector<16x16xf32>, vector<16x8xf32>, vector<16x8xf32> -> vector<16x8xf32>
    %182 = vector.extract_strided_slice %159 {offsets = [0, 8], sizes = [16, 8], strides = [1, 1]} : vector<16x32xf32> to vector<16x8xf32>
    %183 = vector.extract_strided_slice %164 {offsets = [0, 0], sizes = [16, 8], strides = [1, 1]} : vector<16x16xf32> to vector<16x8xf32>
    %184 = vector.extract_strided_slice %165 {offsets = [0, 0], sizes = [16, 8], strides = [1, 1]} : vector<16x16xf32> to vector<16x8xf32>
    %cst_68 = arith.constant dense<0.000000e+00> : vector<16x16xf32>
    %185 = tpu.matmul %182, %183, %cst_68 {dimension_numbers = #tpu.dot_dimension_numbers<[1], [1], [0], [0], [0, 0, 1, 0], [], []>} : vector<16x8xf32>, vector<16x8xf32>, vector<16x16xf32> -> vector<16x16xf32>
    %186 = arith.addf %185, %5 : vector<16x16xf32>
    %cst_69 = arith.constant dense<0xFF800000> : vector<16xf32>
    %187 = vector.multi_reduction <maximumf>, %186, %cst_69 [1] : vector<16x16xf32> to vector<16xf32>
    %188 = vector.shape_cast %187 : vector<16xf32> to vector<16x1xf32>
    %189 = vector.broadcast %188 : vector<16x1xf32> to vector<16x16xf32>
    %190 = arith.subf %186, %189 : vector<16x16xf32>
    %191 = math.exp %190 : vector<16x16xf32>
    %cst_70 = arith.constant dense<0.000000e+00> : vector<16xf32>
    %192 = vector.multi_reduction <add>, %191, %cst_70 [1] : vector<16x16xf32> to vector<16xf32>
    %193 = vector.shape_cast %192 : vector<16xf32> to vector<16x1xf32>
    %194 = tpu.reciprocal %193 : vector<16x1xf32> -> vector<16x1xf32>
    %195 = vector.broadcast %194 : vector<16x1xf32> to vector<16x16xf32>
    %196 = arith.mulf %191, %195 : vector<16x16xf32>
    %cst_71 = arith.constant dense<0.000000e+00> : vector<16x8xf32>
    %197 = tpu.matmul %196, %184, %cst_71 {dimension_numbers = #tpu.dot_dimension_numbers<[1], [0], [0], [1], [0, 0, 1, 1], [], []>} : vector<16x16xf32>, vector<16x8xf32>, vector<16x8xf32> -> vector<16x8xf32>
    %198 = vector.extract_strided_slice %159 {offsets = [0, 16], sizes = [16, 8], strides = [1, 1]} : vector<16x32xf32> to vector<16x8xf32>
    %199 = vector.extract_strided_slice %164 {offsets = [0, 8], sizes = [16, 8], strides = [1, 1]} : vector<16x16xf32> to vector<16x8xf32>
    %200 = vector.extract_strided_slice %165 {offsets = [0, 8], sizes = [16, 8], strides = [1, 1]} : vector<16x16xf32> to vector<16x8xf32>
    %cst_72 = arith.constant dense<0.000000e+00> : vector<16x16xf32>
    %201 = tpu.matmul %198, %199, %cst_72 {dimension_numbers = #tpu.dot_dimension_numbers<[1], [1], [0], [0], [0, 0, 1, 0], [], []>} : vector<16x8xf32>, vector<16x8xf32>, vector<16x16xf32> -> vector<16x16xf32>
    %202 = arith.addf %201, %5 : vector<16x16xf32>
    %cst_73 = arith.constant dense<0xFF800000> : vector<16xf32>
    %203 = vector.multi_reduction <maximumf>, %202, %cst_73 [1] : vector<16x16xf32> to vector<16xf32>
    %204 = vector.shape_cast %203 : vector<16xf32> to vector<16x1xf32>
    %205 = vector.broadcast %204 : vector<16x1xf32> to vector<16x16xf32>
    %206 = arith.subf %202, %205 : vector<16x16xf32>
    %207 = math.exp %206 : vector<16x16xf32>
    %cst_74 = arith.constant dense<0.000000e+00> : vector<16xf32>
    %208 = vector.multi_reduction <add>, %207, %cst_74 [1] : vector<16x16xf32> to vector<16xf32>
    %209 = vector.shape_cast %208 : vector<16xf32> to vector<16x1xf32>
    %210 = tpu.reciprocal %209 : vector<16x1xf32> -> vector<16x1xf32>
    %211 = vector.broadcast %210 : vector<16x1xf32> to vector<16x16xf32>
    %212 = arith.mulf %207, %211 : vector<16x16xf32>
    %cst_75 = arith.constant dense<0.000000e+00> : vector<16x8xf32>
    %213 = tpu.matmul %212, %200, %cst_75 {dimension_numbers = #tpu.dot_dimension_numbers<[1], [0], [0], [1], [0, 0, 1, 1], [], []>} : vector<16x16xf32>, vector<16x8xf32>, vector<16x8xf32> -> vector<16x8xf32>
    %214 = vector.extract_strided_slice %159 {offsets = [0, 24], sizes = [16, 8], strides = [1, 1]} : vector<16x32xf32> to vector<16x8xf32>
    %215 = vector.extract_strided_slice %164 {offsets = [0, 8], sizes = [16, 8], strides = [1, 1]} : vector<16x16xf32> to vector<16x8xf32>
    %216 = vector.extract_strided_slice %165 {offsets = [0, 8], sizes = [16, 8], strides = [1, 1]} : vector<16x16xf32> to vector<16x8xf32>
    %cst_76 = arith.constant dense<0.000000e+00> : vector<16x16xf32>
    %217 = tpu.matmul %214, %215, %cst_76 {dimension_numbers = #tpu.dot_dimension_numbers<[1], [1], [0], [0], [0, 0, 1, 0], [], []>} : vector<16x8xf32>, vector<16x8xf32>, vector<16x16xf32> -> vector<16x16xf32>
    %218 = arith.addf %217, %5 : vector<16x16xf32>
    %cst_77 = arith.constant dense<0xFF800000> : vector<16xf32>
    %219 = vector.multi_reduction <maximumf>, %218, %cst_77 [1] : vector<16x16xf32> to vector<16xf32>
    %220 = vector.shape_cast %219 : vector<16xf32> to vector<16x1xf32>
    %221 = vector.broadcast %220 : vector<16x1xf32> to vector<16x16xf32>
    %222 = arith.subf %218, %221 : vector<16x16xf32>
    %223 = math.exp %222 : vector<16x16xf32>
    %cst_78 = arith.constant dense<0.000000e+00> : vector<16xf32>
    %224 = vector.multi_reduction <add>, %223, %cst_78 [1] : vector<16x16xf32> to vector<16xf32>
    %225 = vector.shape_cast %224 : vector<16xf32> to vector<16x1xf32>
    %226 = tpu.reciprocal %225 : vector<16x1xf32> -> vector<16x1xf32>
    %227 = vector.broadcast %226 : vector<16x1xf32> to vector<16x16xf32>
    %228 = arith.mulf %223, %227 : vector<16x16xf32>
    %cst_79 = arith.constant dense<0.000000e+00> : vector<16x8xf32>
    %229 = tpu.matmul %228, %216, %cst_79 {dimension_numbers = #tpu.dot_dimension_numbers<[1], [0], [0], [1], [0, 0, 1, 1], [], []>} : vector<16x16xf32>, vector<16x8xf32>, vector<16x8xf32> -> vector<16x8xf32>
    %230 = tpu.concatenate %181, %197, %213, %229 in 1 : vector<16x8xf32>, vector<16x8xf32>, vector<16x8xf32>, vector<16x8xf32> -> vector<16x32xf32>
    %231 = arith.truncf %230 : vector<16x32xf32> to vector<16x32xbf16>
    %c1_80 = arith.constant 1 : index
    %c0_81 = arith.constant 0 : index
    %c0_82 = arith.constant 0 : index
    %232 = vector.load %arg2[%c1_80, %c0_81, %c0_82] : memref<2x32x32xbf16, #tpu.memory_space<vmem>>, vector<1x32x32xbf16>
    %233 = vector.shape_cast %232 : vector<1x32x32xbf16> to vector<32x32xbf16>
    %cst_83 = arith.constant dense<0.000000e+00> : vector<16x32xf32>
    %234 = tpu.matmul %231, %233, %cst_83 {dimension_numbers = #tpu.dot_dimension_numbers<[1], [0], [0], [1], [0, 0, 1, 1], [], []>} : vector<16x32xbf16>, vector<32x32xbf16>, vector<16x32xf32> -> vector<16x32xf32>
    %235 = arith.addf %136, %234 : vector<16x32xf32>
    %c1_84 = arith.constant 1 : index
    %c0_85 = arith.constant 0 : index
    %c0_86 = arith.constant 0 : index
    %236 = vector.load %arg6[%c1_84, %c0_85, %c0_86] : memref<2x1x32xf32, #tpu.memory_space<vmem>>, vector<1x1x32xf32>
    %237 = vector.shape_cast %236 : vector<1x1x32xf32> to vector<1x32xf32>
    %238 = arith.mulf %235, %235 : vector<16x32xf32>
    %cst_87 = arith.constant dense<0.000000e+00> : vector<16xf32>
    %239 = vector.multi_reduction <add>, %238, %cst_87 [1] : vector<16x32xf32> to vector<16xf32>
    %240 = vector.shape_cast %239 : vector<16xf32> to vector<16x1xf32>
    %cst_88 = arith.constant 3.200000e+01 : f32
    %241 = vector.broadcast %cst_88 : f32 to vector<16x1xf32>
    %242 = arith.divf %240, %241 : vector<16x1xf32>
    %cst_89 = arith.constant 9.99999974E-6 : f32
    %243 = vector.broadcast %cst_89 : f32 to vector<16x1xf32>
    %244 = arith.addf %242, %243 : vector<16x1xf32>
    %245 = math.rsqrt %244 : vector<16x1xf32>
    %246 = vector.broadcast %245 : vector<16x1xf32> to vector<16x32xf32>
    %247 = arith.mulf %235, %246 : vector<16x32xf32>
    %248 = vector.broadcast %237 : vector<1x32xf32> to vector<16x32xf32>
    %249 = arith.mulf %247, %248 : vector<16x32xf32>
    %250 = arith.truncf %249 : vector<16x32xf32> to vector<16x32xbf16>
    %c1_90 = arith.constant 1 : index
    %c0_91 = arith.constant 0 : index
    %c0_92 = arith.constant 0 : index
    %251 = vector.load %arg3[%c1_90, %c0_91, %c0_92] : memref<2x32x192xbf16, #tpu.memory_space<vmem>>, vector<1x32x192xbf16>
    %252 = vector.shape_cast %251 : vector<1x32x192xbf16> to vector<32x192xbf16>
    %cst_93 = arith.constant dense<0.000000e+00> : vector<16x192xf32>
    %253 = tpu.matmul %250, %252, %cst_93 {dimension_numbers = #tpu.dot_dimension_numbers<[1], [0], [0], [1], [0, 0, 1, 1], [], []>} : vector<16x32xbf16>, vector<32x192xbf16>, vector<16x192xf32> -> vector<16x192xf32>
    %254 = vector.extract_strided_slice %253 {offsets = [0, 0], sizes = [16, 96], strides = [1, 1]} : vector<16x192xf32> to vector<16x96xf32>
    %255 = vector.extract_strided_slice %253 {offsets = [0, 96], sizes = [16, 96], strides = [1, 1]} : vector<16x192xf32> to vector<16x96xf32>
    %256 = arith.negf %254 : vector<16x96xf32>
    %257 = math.exp %256 : vector<16x96xf32>
    %cst_94 = arith.constant 1.000000e+00 : f32
    %258 = vector.broadcast %cst_94 : f32 to vector<16x96xf32>
    %259 = arith.addf %258, %257 : vector<16x96xf32>
    %260 = arith.divf %258, %259 : vector<16x96xf32>
    %261 = arith.mulf %254, %260 : vector<16x96xf32>
    %262 = arith.mulf %261, %255 : vector<16x96xf32>
    %263 = arith.truncf %262 : vector<16x96xf32> to vector<16x96xbf16>
    %c1_95 = arith.constant 1 : index
    %c0_96 = arith.constant 0 : index
    %c0_97 = arith.constant 0 : index
    %264 = vector.load %arg4[%c1_95, %c0_96, %c0_97] : memref<2x96x32xbf16, #tpu.memory_space<vmem>>, vector<1x96x32xbf16>
    %265 = vector.shape_cast %264 : vector<1x96x32xbf16> to vector<96x32xbf16>
    %cst_98 = arith.constant dense<0.000000e+00> : vector<16x32xf32>
    %266 = tpu.matmul %263, %265, %cst_98 {dimension_numbers = #tpu.dot_dimension_numbers<[1], [0], [0], [1], [0, 0, 1, 1], [], []>} : vector<16x96xbf16>, vector<96x32xbf16>, vector<16x32xf32> -> vector<16x32xf32>
    %267 = arith.addf %235, %266 : vector<16x32xf32>
    %c0_99 = arith.constant 0 : index
    %c0_100 = arith.constant 0 : index
    %268 = vector.load %arg12[%c0_99, %c0_100] : memref<16x32xf32, #tpu.memory_space<vmem>>, vector<16x32xf32>
    tpu.vector_store %arg12[%c0_99, %c0_100], %267 {strides = array<i32>} : memref<16x32xf32, #tpu.memory_space<vmem>>, vector<16x32xf32>,
    return
  }
}

</mosaic_0001>

<bundles_post_ra>
// kernel: base_transformer_forward.1
= control target key start
LH: loop header
LB: loop body
LE: loop exit
PB: predicated region body
PF: predicated region fallthrough
CT: control target
= control target key end

     0   :  { %17 = vsyncpa [#allocation3], 0  ;;  %s3993_s0 = inlined_call_operand.hbm [shape: f32[16,32], index: 0, kind: input, shape index: {}]   ;;  %s3994_s1 = inlined_call_operand.vmem [shape: bf16[2,32,112], index: 1, kind: input, shape index: {}]   ;;  %s3995_s2 = inlined_call_operand.vmem [shape: bf16[2,32,32], index: 2, kind: input, shape index: {}]   ;;  %s3996_s3 = inlined_call_operand.vmem [shape: bf16[2,32,192], index: 3, kind: input, shape index: {}]   ;;  %s3997_s4 = inlined_call_operand.vmem [shape: bf16[2,96,32], index: 4, kind: input, shape index: {}]   ;;  %s3998_s5 = inlined_call_operand.hbm [shape: f32[2,1,32], index: 5, kind: input, shape index: {}]   ;;  %s3999_s6 = inlined_call_operand.hbm [shape: f32[2,1,32], index: 6, kind: input, shape index: {}]   ;;  %s4000_s7 = inlined_call_operand.hbm [shape: f32[16,32], index: 7, kind: input, shape index: {}]   ;;  %s4001_s8 = inlined_call_operand.vmem [shape: f32[16,32], index: 8, kind: input, shape index: {}]   ;;  %s4002_s9 = inlined_call_operand.hbm [shape: f32[16,16], index: 9, kind: input, shape index: {}]   ;;  %s4003_s10 = inlined_call_operand.hbm [shape: f32[16,16], index: 10, kind: input, shape index: {}]   ;;  %s4004_s11 = inlined_call_operand.hbm [shape: f32[16,16], index: 11, kind: input, shape index: {}]   ;;  %s4005_s12 = inlined_call_operand.hbm [shape: f32[16,32], index: 12, kind: output, shape index: {}]  }
   0x1   :  { %18 = vsyncpa [#allocation6], 0 }
   0x2   :  { %19 = vsyncpa [#allocation9], 0 }
   0x3   :  { %20 = vsyncpa [#allocation12], 0 }
   0x4   :  { %21 = vsyncpa [#allocation4], 0  ;;  %s3352_s21 = smov [#allocation5]  }
   0x5   :  { %s47_s22 = sshll.u32 %s3352_s21, 4  ;;  %s48_s22 = int_to_ptr.vmem [resolvable:$true] %s47_s22 }
   0x6   :  { %s3190_s23 = scalar_lea.vmem %s48_s22, 32  ;;  %p3195_p1 = scmp.lt.s32.totalorder %s48_s22, %s48_s22 }
   0x7   :  { %p3191_p0 = scmp.ne.s32.totalorder %s48_s22, %s3190_s23  ;;  %p3196_p2 = scmp.lt.s32.totalorder %s3190_s23, %s3190_s23 }
   0x9   :  { %p3197_p3 = por %p3196_p2, %p3195_p1 }
   0xb   :  { %p3198_p4 = pnand %p3197_p3, %p3191_p0 }
   0xd   :  { %3201 = shalt.err (!%p3198_p4)
}
   0xe   :  { %s3353_s24 = smov 16   ;;  %s3354_s25 = smov 1  }
   0xf   :  { %53 = dma.hbm_to_vmem [thread:$0]  %s3998_s5, 32, %s48_s22, [#allocation6], %s3353_s24, %s3353_s24, %s3354_s25  }
  0x10   :  { %s3355_s28 = smov [#allocation8]   ;;  %s3356_s30 = smov [#allocation11]  }
  0x11   :  { %s71_s29 = sshll.u32 %s3355_s28, 4  ;;  %s97_s13 = sshll.u32 %s3356_s30, 4  ;;  %s72_s29 = int_to_ptr.vmem [resolvable:$true] %s71_s29  ;;  %s98_s13 = int_to_ptr.vmem [resolvable:$true] %s97_s13 }
  0x12   :  { %s3210_s14 = scalar_lea.vmem %s72_s29, 256  ;;  %p3215_p6 = scmp.lt.s32.totalorder %s72_s29, %s72_s29 }
  0x13   :  { %p3211_p5 = scmp.ne.s32.totalorder %s72_s29, %s3210_s14  ;;  %p3216_p7 = scmp.lt.s32.totalorder %s3210_s14, %s3210_s14 }
  0x15   :  { %p3217_p8 = por %p3216_p7, %p3215_p6 }
  0x17   :  { %p3218_p9 = pnand %p3217_p8, %p3211_p5 }
  0x19   :  { %3221 = shalt.err (!%p3218_p9)
}
  0x1a   :  { %s3357_s15 = smov 128   ;;  %s3358_s16 = smov 8  }
  0x1b   :  { %77 = dma.hbm_to_vmem [thread:$0]  %s4000_s7, 256, %s72_s29, [#allocation9], %s3357_s15, %s3357_s15, %s3358_s16  }
  0x1c   :  { %s3230_s5 = scalar_lea.vmem %s98_s13, 256  ;;  %p3235_p11 = scmp.lt.s32.totalorder %s98_s13, %s98_s13 }
  0x1d   :  { %p3231_p10 = scmp.ne.s32.totalorder %s98_s13, %s3230_s5  ;;  %p3236_p12 = scmp.lt.s32.totalorder %s3230_s5, %s3230_s5 }
  0x1f   :  { %p3237_p13 = por %p3236_p12, %p3235_p11 }
  0x21   :  { %p3238_p0 = pnand %p3237_p13, %p3231_p10 }
  0x23   :  { %3241 = shalt.err (!%p3238_p0)
}
  0x24   :  { %103 = dma.hbm_to_vmem [thread:$0]  %s4003_s10, 256, %s98_s13, [#allocation12], %s3357_s15, %s3357_s15, %s3358_s16  }
  0x25   :  { %s3359_s21 = smov [#allocation2]   ;;  %s3360_s23 = smov [#allocation7]  }
  0x26   :  { %s27_s22 = sshll.u32 %s3359_s21, 4  ;;  %s59_s7 = sshll.u32 %s3360_s23, 4  ;;  %s28_s22 = int_to_ptr.vmem [resolvable:$true] %s27_s22  ;;  %s60_s7 = int_to_ptr.vmem [resolvable:$true] %s59_s7 }
  0x27   :  { %s3250_s26 = scalar_lea.vmem %s28_s22, 256  ;;  %p3255_p2 = scmp.lt.s32.totalorder %s28_s22, %s28_s22 }
  0x28   :  { %p3251_p1 = scmp.ne.s32.totalorder %s28_s22, %s3250_s26  ;;  %p3256_p3 = scmp.lt.s32.totalorder %s3250_s26, %s3250_s26 }
  0x2a   :  { %p3257_p4 = por %p3256_p3, %p3255_p2 }
  0x2c   :  { %p3258_p5 = pnand %p3257_p4, %p3251_p1 }
  0x2e   :  { %3261 = shalt.err (!%p3258_p5)
}
  0x2f   :  { %33 = dma.hbm_to_vmem [thread:$0]  %s3993_s0, 256, %s28_s22, [#allocation3], %s3357_s15, %s3357_s15, %s3358_s16  }
  0x30   :  { %s3270_s10 = scalar_lea.vmem %s60_s7, 32  ;;  %p3275_p7 = scmp.lt.s32.totalorder %s60_s7, %s60_s7 }
  0x31   :  { %p3271_p6 = scmp.ne.s32.totalorder %s60_s7, %s3270_s10  ;;  %p3276_p8 = scmp.lt.s32.totalorder %s3270_s10, %s3270_s10 }
  0x33   :  { %p3277_p9 = por %p3276_p8, %p3275_p7 }
  0x35   :  { %p3278_p10 = pnand %p3277_p9, %p3271_p6 }
  0x37   :  { %3281 = shalt.err (!%p3278_p10)
}
  0x38   :  { %65 = dma.hbm_to_vmem [thread:$0]  %s3999_s6, 32, %s60_s7, [#allocation6], %s3353_s24, %s3353_s24, %s3354_s25  }
  0x39   :  { %s3361_s13 = smov [#allocation10]   ;;  %s3362_s17 = smov [#allocation13]  }
  0x3a   :  { %s85_s14 = sshll.u32 %s3361_s13, 4  ;;  %s109_s0 = sshll.u32 %s3362_s17, 4  ;;  %s86_s14 = int_to_ptr.vmem [resolvable:$true] %s85_s14  ;;  %s110_s0 = int_to_ptr.vmem [resolvable:$true] %s109_s0 }
  0x3b   :  { %s3290_s18 = scalar_lea.vmem %s86_s14, 256  ;;  %p3295_p12 = scmp.lt.s32.totalorder %s86_s14, %s86_s14 }
  0x3c   :  { %p3291_p11 = scmp.ne.s32.totalorder %s86_s14, %s3290_s18  ;;  %p3296_p13 = scmp.lt.s32.totalorder %s3290_s18, %s3290_s18 }
  0x3e   :  { %p3297_p0 = por %p3296_p13, %p3295_p12 }
  0x40   :  { %p3298_p1 = pnand %p3297_p0, %p3291_p11 }
  0x42   :  { %3301 = shalt.err (!%p3298_p1)
}
  0x43   :  { %91 = dma.hbm_to_vmem [thread:$0]  %s4002_s9, 256, %s86_s14, [#allocation9], %s3357_s15, %s3357_s15, %s3358_s16  }
  0x44   :  { %s3310_s6 = scalar_lea.vmem %s110_s0, 256  ;;  %p3315_p3 = scmp.lt.s32.totalorder %s110_s0, %s110_s0 }
  0x45   :  { %p3311_p2 = scmp.ne.s32.totalorder %s110_s0, %s3310_s6  ;;  %p3316_p4 = scmp.lt.s32.totalorder %s3310_s6, %s3310_s6 }
  0x47   :  { %p3317_p5 = por %p3316_p4, %p3315_p3 }
  0x49   :  { %p3318_p6 = pnand %p3317_p5, %p3311_p2 }
  0x4b   :  { %3321 = shalt.err (!%p3318_p6)
}
  0x4c   :  { %115 = dma.hbm_to_vmem [thread:$0]  %s4004_s11, 256, %s110_s0, [#allocation12], %s3357_s15, %s3357_s15, %s3358_s16  }
  0x4d   :  { %3342 = dma.done.wait [#allocation3], 256  }
  0x4e   :  { %3343 = vsyncadd [#allocation3], 4294967040 }
  0x4f   :  { %3344 = dma.done.wait [#allocation6], 64  }
  0x50   :  { %3345 = vsyncadd [#allocation6], 4294967232 }
  0x51   :  { %3346 = dma.done.wait [#allocation9], 512  }
  0x52   :  { %3347 = vsyncadd [#allocation9], 4294966784 }
  0x53   :  { %3348 = dma.done.wait [#allocation12], 512  }
  0x54   :  { %3349 = vsyncadd [#allocation12], 4294966784  ;;  %v3483_v0 = vld [vmem:[#allocation2] sm:$0xff]  ;;  %vm153_vm0 = vcmask 261120   ;;  %v3485_v1 = vld [vmem:[#allocation2 + $0x8] sm:$0xff]  ;;  %v3363_v7 = vmov 0.0  }
  0x55   :  { %v151_v2 = vmul.f32 %v3483_v0, %v3483_v0  ;;  %v152_v3 = vmul.f32 %v3485_v1, %v3485_v1  ;;  %v3052_v6 = vld [vmem:[%s3994_s1 + $0x8] sm:$0xff]   ;;  %2822 = vmatprep.subr.bf16.mxu0 %v3363_v7  ;;  %vm3364_vm1 = vmmov 0   ;;  %v3053_v8 = vld [vmem:[%s3994_s1] sm:$0xff]   ;;  %s3365_s23 = smov 80   ;;  %v146_v11 = vld [vmem:[#allocation11] sm:$0xff]  ;;  %s3366_s27 = smov 32  }
  0x56   :  { %2826 = vmatprep.mubr.msk.bf16.mxu0 %vm3364_vm1, %v3363_v7  ;;  %2823 = vmatpush3.bf16.msra.mxu0 %v3052_v6  ;;  %v147_v9 = vld [vmem:[#allocation11 + $0x8] sm:$0xff]  ;;  %v143_v12 = vld [vmem:[%s4001_s8 + $0x8] sm:$0xff]  ;;  %s3367_s29 = smov 64   ;;  %v2616_v24 = vld [vmem:[#allocation5] ss:$0 sm:$0xff]  ;;  %s3369_s30 = smov 96  }
  0x57   :  { %v154_v4 = vsel %vm153_vm0, %v151_v2, 0.0  ;;  %v157_v5 = vsel %vm153_vm0, %v152_v3, 0.0  ;;  %2824 = vmatprep.subr.bf16.mxu0 %v3363_v7  ;;  %274 = vrot.lane.b32.xlu1 %v147_v9, %s3365_s23  ;;  %v142_v10 = vld [vmem:[%s4001_s8] sm:$0xff]  ;;  %v145_v13 = vld [vmem:[#allocation10 + $0x8] sm:$0xff]  ;;  %s3368_s8 = smov 112   ;;  %v3549_v48 = vld [vmem:[#allocation8] sm:$0xff] }
  0x58   :  { %155 = vadd.xlane.f32.xlu0 %v154_v4  ;;  %v144_v14 = vld [vmem:[#allocation10] sm:$0xff]  ;;  %v3554_v51 = vld [vmem:[#allocation8 + $0x8] sm:$0xff]  ;;  %vm296_vm2 = vcmask 64512   ;;  %s3370_s13 = smov 56   ;;  %s3371_s14 = smov 120   ;;  %v3600_v3 = vld [vmem:[#allocation13 + $0x8] sm:$0xff] }
  0x59   :  { %vm382_vm3 = vcmask 130048   ;;  %s3372_s17 = smov 24   ;;  %s3373_s0 = smov 104   ;;  %vm1094_vm4 = vcmask 195584   ;;  %vm1337_vm5 = vcmask 785408  }
  0x5a   :  { %2825 = vmatpush3.bf16.msra.mxu0 %v3053_v8 }
  0x5b   :  { %272 = vrot.lane.b32.xlu1 %v146_v11, %s3365_s23 }
  0x5c   :  { %158 = vadd.xlane.f32.xlu0 %v157_v5  ;;  %v3602_v5 = vld [vmem:[#allocation13] sm:$0xff] }
  0x5f   :  { %244 = vrot.lane.b32.xlu1 %v143_v12, %s3366_s27 }
  0x63   :  { %264 = vrot.lane.b32.xlu1 %v145_v13, %s3367_s29 }
  0x67   :  { %262 = vrot.lane.b32.xlu1 %v144_v14, %s3367_s29 }
  0x72   :  { %242 = vrot.lane.b32.xlu0 %v142_v10, %s3366_s27 }
  0xc9   :  { %v3516_v29 = vpop.permute.xlu1 %274 }
  0xcd   :  { %v3518_v30 = vpop.permute.xlu1 %272 }
  0xd1   :  { %v3522_v33 = vpop.permute.xlu1 %244 }
  0xd5   :  { %v3540_v41 = vpop.permute.xlu1 %264 }
  0xd9   :  { %v3542_v42 = vpop.permute.xlu1 %262 }
  0xe1   :  { %v156_v15 = vpop.xlane.xlu0 %155 }
  0xe2   :  { %v161_v16 = vmul.f32 0.03125, %v156_v15 }
  0xe4   :  { %v163_v17 = vadd.f32 1e-05, %v161_v16 }
  0xe5   :  { %v159_v18 = vpop.xlane.xlu0 %158 }
  0xe6   :  { %3084 = vrsqrt.f32 %v163_v17  ;;  %v162_v19 = vmul.f32 0.03125, %v159_v18 }
  0xe8   :  { %v164_v20 = vadd.f32 1e-05, %v162_v19 }
  0xe9   :  { %v3534_v39 = vpop.permute.xlu0 %242 }
  0xea   :  { %3086 = vrsqrt.f32 %v164_v20 }
  0xf3   :  { %v3085_v21 = vpop.eup %3084 }
  0xf4   :  { %v167_v22 = vmul.f32 %v3085_v21, %v3483_v0 }
  0xf6   :  { %v175_v26 = vmul.f32 %v2616_v24, %v167_v22 }
  0xf7   :  { %v3087_v23 = vpop.eup %3086 }
  0xf8   :  { %v168_v25 = vmul.f32 %v3087_v23, %v3485_v1 }
  0xfa   :  { %v176_v27 = vmul.f32 %v2616_v24, %v168_v25 }
  0xfc   :  { %v177_v28 = vpack.c.bf16 %v176_v27, %v175_v26 }
  0xfe   :  { %2827 = vmatmul.mubr.msk.bf16.vlgmr.msra.gmra.mxu0 %vm153_vm0, %v177_v28 }
 0x1be   :  { %v3520_v31 = vpop.f32.mrf.mxu0 }
 0x1bf   :  { %v278_v38 = vmul.f32 %v3518_v30, %v3520_v31  ;;  %v248_v40 = vmul.f32 %v3534_v39, %v3520_v31  ;;  %v268_v46 = vmul.f32 %v3542_v42, %v3520_v31  ;;  %v238_v50 = vmul.f32 %v3520_v31, %v3549_v48 }
 0x1c0   :  { %v2828_v32 = vpop.f32.mrf.mxu0 }
 0x1c2   :  { %v3524_v34 = vpop.f32.mrf.mxu0 }
 0x1c3   :  { %v279_v35 = vmul.f32 %v3516_v29, %v3524_v34  ;;  %v249_v36 = vmul.f32 %v3522_v33, %v3524_v34  ;;  %v269_v43 = vmul.f32 %v3540_v41, %v3524_v34  ;;  %v239_v55 = vmul.f32 %v3524_v34, %v3554_v51 }
 0x1c4   :  { %v2829_v37 = vpop.f32.mrf.mxu0 }
 0x1c5   :  { %284 = vrot.lane.b32.xlu1 %v279_v35, %s3368_s8  ;;  %254 = vrot.lane.b32.xlu0 %v249_v36, %s3369_s30 }
 0x1c9   :  { %282 = vrot.lane.b32.xlu1 %v278_v38, %s3368_s8 }
 0x1cd   :  { %252 = vrot.lane.b32.xlu1 %v248_v40, %s3369_s30 }
 0x237   :  { %v285_v44 = vpop.permute.xlu1 %284  ;;  %v255_v54 = vpop.permute.xlu0 %254 }
 0x238   :  { %v289_v45 = vadd.f32 %v285_v44, %v269_v43  ;;  %v3565_v56 = vadd.f32 %v255_v54, %v239_v55 }
 0x23a   :  { %294 = vrot.lane.b32.xlu1 %v289_v45, %s3367_s29 }
 0x23b   :  { %v283_v47 = vpop.permute.xlu1 %282 }
 0x23c   :  { %v288_v49 = vadd.f32 %v283_v47, %v268_v46 }
 0x23e   :  { %292 = vrot.lane.b32.xlu0 %v288_v49, %s3367_s29 }
 0x23f   :  { %v253_v52 = vpop.permute.xlu1 %252 }
 0x240   :  { %v3556_v53 = vadd.f32 %v253_v52, %v238_v50 }
 0x242   :  { %686 = vrot.lane.b32.xlu0 %v289_v45, %s3370_s13  ;;  %494 = vrot.lane.b32.xlu1 %v3556_v53, %s3371_s14 }
 0x243   :  { %2834 = vmatprep.mubr.msk.f32.mxu0 %vm296_vm2, %v3556_v53 }
 0x246   :  { %684 = vrot.lane.b32.xlu0 %v288_v49, %s3370_s13  ;;  %496 = vrot.lane.b32.xlu1 %v3565_v56, %s3371_s14 }
 0x24a   :  { %682 = vrot.lane.b32.xlu0 %v3565_v56, %s3368_s8  ;;  %680 = vrot.lane.b32.xlu1 %v3556_v53, %s3368_s8 }
 0x2ac   :  { %v295_v57 = vpop.permute.xlu1 %294 }
 0x2ad   :  { %2830 = vmatprep.subr.msk.mxu0 %vm296_vm2, %v295_v57 }
 0x2ae   :  { %2831 = vmatpush3.xpose.msk.msra.mxu0 %vm296_vm2, %v295_v57 }
 0x2b0   :  { %v293_v58 = vpop.permute.xlu0 %292 }
 0x2b1   :  { %2832 = vmatprep.subr.msk.mxu0 %vm296_vm2, %v293_v58 }
 0x2b2   :  { %2833 = vmatpush3.xpose.msk.msra.mxu0 %vm296_vm2, %v293_v58 }
 0x2b3   :  { %2844 = vmatprep.subr.msk.mxu0 %vm296_vm2, %v295_v57 }
 0x2b4   :  { %v495_v59 = vpop.permute.xlu1 %494  ;;  %v3584_v60 = vpop.permute.xlu0 %686 }
 0x2b5   :  { %2835 = vmatmul.mubr.msk.f32.vlgmr.msra.gmra.mxu0 %vm296_vm2, %v3565_v56 }
 0x2b6   :  { %2845 = vmatpush3.xpose.msk.msra.mxu0 %vm296_vm2, %v295_v57  ;;  %2848 = vmatprep.mubr.msk.f32.mxu0 %vm296_vm2, %v495_v59 }
 0x2b7   :  { %2846 = vmatprep.subr.msk.mxu0 %vm296_vm2, %v293_v58 }
 0x2b8   :  { %v497_v61 = vpop.permute.xlu1 %496  ;;  %v3590_v63 = vpop.permute.xlu0 %684 }
 0x2ba   :  { %2847 = vmatpush3.xpose.msk.msra.mxu0 %vm296_vm2, %v293_v58 }
 0x2bb   :  { %2858 = vmatprep.subr.msk.mxu0 %vm296_vm2, %v3584_v60 }
 0x2bc   :  { %v681_v62 = vpop.permute.xlu1 %680  ;;  %v683_v2 = vpop.permute.xlu0 %682 }
 0x2bd   :  { %2849 = vmatmul.mubr.msk.f32.vlgmr.msra.gmra.mxu0 %vm296_vm2, %v497_v61 }
 0x2be   :  { %2859 = vmatpush3.xpose.msk.msra.mxu0 %vm296_vm2, %v3584_v60  ;;  %2862 = vmatprep.mubr.msk.f32.mxu0 %vm296_vm2, %v681_v62 }
 0x2bf   :  { %2860 = vmatprep.subr.msk.mxu0 %vm296_vm2, %v3590_v63 }
 0x2c2   :  { %2861 = vmatpush3.xpose.msk.msra.mxu0 %vm296_vm2, %v3590_v63 }
 0x2c5   :  { %2863 = vmatmul.mubr.msk.f32.vlgmr.msra.gmra.mxu0 %vm296_vm2, %v683_v2 }
 0x375   :  { %v2836_v4 = vpop.f32.mrf.mxu0 }
 0x376   :  { %v379_v6 = vadd.f32 %v2836_v4, %v3600_v3 }
 0x377   :  { %v373_v8 = vpop.f32.mrf.mxu0 }
 0x378   :  { %v374_v9 = vadd.f32 %v373_v8, %v3602_v5  ;;  %v386_v10 = vsel %vm382_vm3, %v379_v6, -inf }
 0x379   :  { %387 = vmax.xlane.f32.xlu0 %v386_v10 }
 0x37a   :  { %v383_v11 = vsel %vm382_vm3, %v374_v9, -inf }
 0x37b   :  { %384 = vmax.xlane.f32.xlu1 %v383_v11 }
 0x37d   :  { %v2850_v12 = vpop.f32.mrf.mxu0 }
 0x37e   :  { %v574_v13 = vadd.f32 %v2850_v12, %v3600_v3 }
 0x37f   :  { %v568_v14 = vpop.f32.mrf.mxu0 }
 0x380   :  { %v569_v15 = vadd.f32 %v568_v14, %v3602_v5  ;;  %v580_v16 = vsel %vm382_vm3, %v574_v13, -inf }
 0x381   :  { %581 = vmax.xlane.f32.xlu1 %v580_v16 }
 0x382   :  { %v577_v17 = vsel %vm382_vm3, %v569_v15, -inf }
 0x383   :  { %578 = vmax.xlane.f32.xlu0 %v577_v17 }
 0x385   :  { %v2864_v18 = vpop.f32.mrf.mxu0 }
 0x386   :  { %v768_v19 = vadd.f32 %v2864_v18, %v3600_v3 }
 0x387   :  { %v762_v20 = vpop.f32.mrf.mxu0 }
 0x388   :  { %v763_v21 = vadd.f32 %v762_v20, %v3602_v5  ;;  %v774_v22 = vsel %vm382_vm3, %v768_v19, -inf }
 0x389   :  { %775 = vmax.xlane.f32.xlu1 %v774_v22 }
 0x38a   :  { %v771_v23 = vsel %vm382_vm3, %v763_v21, -inf }
 0x38b   :  { %772 = vmax.xlane.f32.xlu0 %v771_v23 }
 0x39a   :  { %407 = vrot.lane.b32.xlu1 %v3520_v31, %s3366_s27 }
 0x39e   :  { %795 = vrot.lane.b32.xlu1 %v3524_v34, %s3372_s17 }
 0x3a1   :  { %409 = vrot.lane.b32.xlu0 %v3524_v34, %s3366_s27 }
 0x402   :  { %v388_v24 = vpop.xlane.xlu0 %387 }
 0x403   :  { %v390_v25 = vsub.f32 %v379_v6, %v388_v24 }
 0x404   :  { %v385_v26 = vpop.xlane.xlu1 %384 }
 0x405   :  { %v393_v27 = vmul.f32 1.442695, %v390_v25  ;;  %v389_v28 = vsub.f32 %v374_v9, %v385_v26 }
 0x407   :  { %3088 = vpow2.f32 %v393_v27  ;;  %v391_v32 = vmul.f32 1.442695, %v389_v28 }
 0x409   :  { %3090 = vpow2.f32 %v391_v32 }
 0x40a   :  { %v582_v35 = vpop.xlane.xlu1 %581 }
 0x40b   :  { %v584_v36 = vsub.f32 %v574_v13, %v582_v35 }
 0x40c   :  { %v579_v37 = vpop.xlane.xlu0 %578 }
 0x40d   :  { %v587_v38 = vmul.f32 1.442695, %v584_v36  ;;  %v583_v40 = vsub.f32 %v569_v15, %v579_v37 }
 0x40f   :  { %3092 = vpow2.f32 %v587_v38  ;;  %v585_v43 = vmul.f32 1.442695, %v583_v40 }
 0x411   :  { %3094 = vpow2.f32 %v585_v43 }
 0x412   :  { %v776_v44 = vpop.xlane.xlu1 %775 }
 0x413   :  { %v778_v45 = vsub.f32 %v768_v19, %v776_v44 }
 0x414   :  { %v3089_v46 = vpop.eup %3088  ;;  %v773_v34 = vpop.xlane.xlu0 %772 }
 0x415   :  { %v781_v47 = vmul.f32 1.442695, %v778_v45  ;;  %v777_v49 = vsub.f32 %v763_v21, %v773_v34  ;;  %v398_v50 = vsel %vm382_vm3, %v3089_v46, 0.0 }
 0x416   :  { %v3091_v52 = vpop.eup %3090  ;;  %v408_v54 = vpop.permute.xlu1 %407  ;;  %399 = vadd.xlane.f32.xlu1 %v398_v50 }
 0x417   :  { %3096 = vpow2.f32 %v781_v47  ;;  %v779_v55 = vmul.f32 1.442695, %v777_v49  ;;  %v395_v57 = vsel %vm382_vm3, %v3091_v52, 0.0 }
 0x418   :  { %396 = vadd.xlane.f32.xlu0 %v395_v57  ;;  %v410_v58 = vpop.permute.xlu0 %409 }
 0x419   :  { %3098 = vpow2.f32 %v779_v55  ;;  %2837 = vmatprep.subr.mxu1 %v410_v58 }
 0x41a   :  { %v796_v59 = vpop.permute.xlu1 %795  ;;  %2838 = vmatpush3.msra.mxu1 %v410_v58 }
 0x41b   :  { %2839 = vmatprep.subr.mxu1 %v408_v54  ;;  %2879 = vmatprep.subr.mxu0 %v796_v59 }
 0x41c   :  { %v3093_v61 = vpop.eup %3092  ;;  %2840 = vmatpush3.msra.mxu1 %v408_v54  ;;  %2880 = vmatpush3.msra.mxu0 %v796_v59 }
 0x41d   :  { %2851 = vmatprep.subr.mxu1 %v410_v58  ;;  %v592_v62 = vsel %vm382_vm3, %v3093_v61, 0.0 }
 0x41e   :  { %v3095_v2 = vpop.eup %3094  ;;  %593 = vadd.xlane.f32.xlu1 %v592_v62 }
 0x41f   :  { %v589_v4 = vsel %vm382_vm3, %v3095_v2, 0.0 }
 0x420   :  { %590 = vadd.xlane.f32.xlu0 %v589_v4 }
 0x424   :  { %v3097_v6 = vpop.eup %3096 }
 0x425   :  { %v786_v8 = vsel %vm382_vm3, %v3097_v6, 0.0 }
 0x426   :  { %v3099_v9 = vpop.eup %3098  ;;  %787 = vadd.xlane.f32.xlu1 %v786_v8 }
 0x427   :  { %v783_v10 = vsel %vm382_vm3, %v3099_v9, 0.0 }
 0x428   :  { %784 = vadd.xlane.f32.xlu0 %v783_v10 }
 0x437   :  { %880 = vrot.lane.b32.xlu1 %v3556_v53, %s3373_s0 }
 0x43e   :  { %793 = vrot.lane.b32.xlu0 %v3520_v31, %s3372_s17 }
 0x442   :  { %882 = vrot.lane.b32.xlu0 %v3565_v56, %s3373_s0 }
 0x49f   :  { %v400_v11 = vpop.xlane.xlu1 %399 }
 0x4a0   :  { %3100 = vrcp.f32 %v400_v11  ;;  %v3054_v11 = vld [vmem:[%s3995_s2 + $0x8] sm:$0xff]  }
 0x4a1   :  { %v397_v12 = vpop.xlane.xlu0 %396 }
 0x4a2   :  { %3102 = vrcp.f32 %v397_v12  ;;  %v3055_v12 = vld [vmem:[%s3995_s2] sm:$0xff]  }
 0x4a7   :  { %v594_v13 = vpop.xlane.xlu1 %593 }
 0x4a8   :  { %3104 = vrcp.f32 %v594_v13 }
 0x4a9   :  { %v591_v14 = vpop.xlane.xlu0 %590 }
 0x4aa   :  { %3106 = vrcp.f32 %v591_v14 }
 0x4ad   :  { %v3101_v15 = vpop.eup %3100 }
 0x4ae   :  { %v404_v19 = vmul.f32 %v3101_v15, %v3089_v46 }
 0x4af   :  { %v3103_v16 = vpop.eup %3102  ;;  %v788_v17 = vpop.xlane.xlu1 %787 }
 0x4b0   :  { %v403_v18 = vmul.f32 %v3103_v16, %v3091_v52  ;;  %3108 = vrcp.f32 %v788_v17 }
 0x4b1   :  { %v785_v53 = vpop.xlane.xlu0 %784 }
 0x4b2   :  { %3110 = vrcp.f32 %v785_v53  ;;  %2841 = vmatprep.mubr.msk.f32.mxu1 %vm382_vm3, %v403_v18 }
 0x4b3   :  { %2842 = vmatmul.mubr.msk.f32.vlgmr.msra.gmra.mxu1 %vm382_vm3, %v404_v19  ;;  %v881_v27 = vpop.permute.xlu1 %880 }
 0x4b4   :  { %2852 = vmatpush3.msra.mxu1 %v410_v58 }
 0x4b5   :  { %2853 = vmatprep.subr.mxu1 %v408_v54  ;;  %v794_v31 = vpop.permute.xlu0 %793  ;;  %v3105_v56 = vpop.eup %3104 }
 0x4b6   :  { %2854 = vmatpush3.msra.mxu1 %v408_v54  ;;  %2881 = vmatprep.subr.mxu0 %v794_v31  ;;  %v598_v22 = vmul.f32 %v3105_v56, %v3093_v61 }
 0x4b7   :  { %v3107_v20 = vpop.eup %3106  ;;  %2865 = vmatprep.subr.mxu1 %v796_v59  ;;  %2882 = vmatpush3.msra.mxu0 %v794_v31 }
 0x4b8   :  { %v597_v21 = vmul.f32 %v3107_v20, %v3095_v2  ;;  %2886 = vmatprep.subr.bf16.mxu0 %v3363_v7 }
 0x4b9   :  { %v883_v28 = vpop.permute.xlu0 %882 }
 0x4ba   :  { %2855 = vmatprep.mubr.msk.f32.mxu1 %vm382_vm3, %v597_v21 }
 0x4bb   :  { %2856 = vmatmul.mubr.msk.f32.vlgmr.msra.gmra.mxu1 %vm382_vm3, %v598_v22 }
 0x4bc   :  { %2866 = vmatpush3.msra.mxu1 %v796_v59 }
 0x4bd   :  { %2867 = vmatprep.subr.mxu1 %v794_v31  ;;  %v3109_v23 = vpop.eup %3108 }
 0x4be   :  { %2868 = vmatpush3.msra.mxu1 %v794_v31  ;;  %v792_v26 = vmul.f32 %v3109_v23, %v3097_v6 }
 0x4bf   :  { %v3111_v24 = vpop.eup %3110  ;;  %2872 = vmatprep.subr.msk.mxu1 %vm296_vm2, %v3584_v60 }
 0x4c0   :  { %v791_v25 = vmul.f32 %v3111_v24, %v3099_v9 }
 0x4c2   :  { %2869 = vmatprep.mubr.msk.f32.mxu1 %vm382_vm3, %v791_v25 }
 0x4c3   :  { %2870 = vmatmul.mubr.msk.f32.vlgmr.msra.gmra.mxu1 %vm382_vm3, %v792_v26 }
 0x4c4   :  { %2873 = vmatpush3.xpose.msk.msra.mxu1 %vm296_vm2, %v3584_v60  ;;  %2876 = vmatprep.mubr.msk.f32.mxu1 %vm296_vm2, %v881_v27 }
 0x4c5   :  { %2874 = vmatprep.subr.msk.mxu1 %vm296_vm2, %v3590_v63 }
 0x4c8   :  { %2875 = vmatpush3.xpose.msk.msra.mxu1 %vm296_vm2, %v3590_v63 }
 0x4cb   :  { %2877 = vmatmul.mubr.msk.f32.vlgmr.msra.gmra.mxu1 %vm296_vm2, %v883_v28 }
 0x573   :  { %v2843_v32 = vpop.f32.mrf.mxu1 }
 0x575   :  { %v485_v35 = vpop.f32.mrf.mxu1 }
 0x57b   :  { %v2857_v36 = vpop.f32.mrf.mxu1 }
 0x57d   :  { %v671_v37 = vpop.f32.mrf.mxu1 }
 0x57e   :  { %v3022_v38 = vpack.i.bf16 %v2857_v36, %v671_v37 }
 0x583   :  { %v2871_v40 = vpop.f32.mrf.mxu1 }
 0x585   :  { %v871_v43 = vpop.f32.mrf.mxu1 }
 0x586   :  { %v3027_v44 = vpack.i.bf16 %v2871_v40, %v871_v43 }
 0x58b   :  { %v2878_v60 = vpop.f32.mrf.mxu1 }
 0x58c   :  { %v960_v45 = vadd.f32 %v2878_v60, %v3600_v3 }
 0x58d   :  { %v954_v46 = vpop.f32.mrf.mxu1 }
 0x58e   :  { %v955_v34 = vadd.f32 %v954_v46, %v3602_v5  ;;  %v966_v47 = vsel %vm382_vm3, %v960_v45, -inf  ;;  %v3056_v46 = vld [vmem:[%s3996_s3 + $0x10] ss:$8 sps:$4 sm:$0xff]  }
 0x58f   :  { %967 = vmax.xlane.f32.xlu0 %v966_v47  ;;  %v3374_v47 = vmov 0  }
 0x590   :  { %v963_v63 = vsel %vm382_vm3, %v955_v34, -inf  ;;  %1245 = vmatprep.mubr.bf16.mxu1 %v3374_v47 }
 0x591   :  { %964 = vmax.xlane.f32.xlu1 %v963_v63 }
 0x618   :  { %v968_v49 = vpop.xlane.xlu0 %967 }
 0x619   :  { %v970_v50 = vsub.f32 %v960_v45, %v968_v49 }
 0x61a   :  { %v965_v52 = vpop.xlane.xlu1 %964 }
 0x61b   :  { %v973_v54 = vmul.f32 1.442695, %v970_v50  ;;  %v969_v55 = vsub.f32 %v955_v34, %v965_v52  ;;  %v3061_v34 = vld [vmem:[%s3996_s3 + $0x4] ss:$8 sps:$4 sm:$0xff]  }
 0x61d   :  { %3112 = vpow2.f32 %v973_v54  ;;  %v971_v57 = vmul.f32 1.442695, %v969_v55 }
 0x61f   :  { %3114 = vpow2.f32 %v971_v57 }
 0x62a   :  { %v3113_v58 = vpop.eup %3112 }
 0x62b   :  { %v978_v59 = vsel %vm382_vm3, %v3113_v58, 0.0 }
 0x62c   :  { %v3115_v61 = vpop.eup %3114  ;;  %979 = vadd.xlane.f32.xlu1 %v978_v59 }
 0x62d   :  { %v975_v62 = vsel %vm382_vm3, %v3115_v61, 0.0 }
 0x62e   :  { %976 = vadd.xlane.f32.xlu0 %v975_v62 }
 0x63d   :  { %3028 = vrot.lane.b32.xlu1 %v3027_v44, %s3353_s24 }
 0x644   :  { %3023 = vrot.lane.b32.xlu0 %v3022_v38, %s3358_s16 }
 0x6b5   :  { %v980_v2 = vpop.xlane.xlu1 %979 }
 0x6b6   :  { %3116 = vrcp.f32 %v980_v2 }
 0x6b7   :  { %v977_v4 = vpop.xlane.xlu0 %976 }
 0x6b8   :  { %3118 = vrcp.f32 %v977_v4 }
 0x6b9   :  { %v3029_v53 = vpop.permute.xlu1 %3028 }
 0x6ba   :  { %v3031_v56 = vunpack.i.h.bf16 %v3029_v53  ;;  %v3030_v20 = vunpack.i.l.bf16 %v3029_v53 }
 0x6bb   :  { %v3024_v16 = vpop.permute.xlu0 %3023 }
 0x6bc   :  { %v3026_v17 = vunpack.i.h.bf16 %v3024_v16  ;;  %v3025_v18 = vunpack.i.l.bf16 %v3024_v16 }
 0x6be   :  { %v1091_v19 = vsel %vm296_vm2, %v2843_v32, %v3026_v17  ;;  %v1090_v31 = vsel %vm296_vm2, %v485_v35, %v3025_v18 }
 0x6bf   :  { %v1092_v24 = vsel %vm382_vm3, %v1090_v31, %v3030_v20  ;;  %v1093_v25 = vsel %vm382_vm3, %v1091_v19, %v3031_v56 }
 0x6c3   :  { %v3117_v6 = vpop.eup %3116 }
 0x6c4   :  { %v984_v10 = vmul.f32 %v3117_v6, %v3113_v58 }
 0x6c5   :  { %v3119_v8 = vpop.eup %3118 }
 0x6c6   :  { %v983_v9 = vmul.f32 %v3119_v8, %v3115_v61  ;;  %v2647_v61 = vld [vmem:[#allocation7] ss:$0 sm:$0xff]  ;;  %v3062_v8 = vld [vmem:[%s3997_s4 + $0x28] sm:$0xff]  }
 0x6c8   :  { %2883 = vmatprep.mubr.msk.f32.mxu0 %vm382_vm3, %v983_v9  ;;  %v3063_v9 = vld [vmem:[%s3997_s4 + $0x20] sm:$0xff]  }
 0x6c9   :  { %2884 = vmatmul.mubr.msk.f32.vlgmr.msra.gmra.mxu0 %vm382_vm3, %v984_v10  ;;  %v3064_v10 = vld [vmem:[%s3997_s4 + $0x18] sm:$0xff]  }
 0x6ca   :  { %2890 = vmatprep.mubr.msk.bf16.mxu0 %vm3364_vm1, %v3363_v7  ;;  %2887 = vmatpush3.bf16.msra.mxu0 %v3054_v11  ;;  %v3065_v11 = vld [vmem:[%s3997_s4 + $0x10] sm:$0xff]  }
 0x6cb   :  { %2888 = vmatprep.subr.bf16.mxu0 %v3363_v7 }
 0x6ce   :  { %2889 = vmatpush3.bf16.msra.mxu0 %v3055_v12  ;;  %v3066_v12 = vld [vmem:[%s3997_s4 + $0x8] sm:$0xff]  }
 0x6cf   :  { %2894 = vmatprep.subr.bf16.mxu0 %v3363_v7 }
 0x789   :  { %v2885_v13 = vpop.f32.mrf.mxu0 }
 0x78b   :  { %v1057_v14 = vpop.f32.mrf.mxu0 }
 0x78c   :  { %v3032_v15 = vpack.i.bf16 %v2885_v13, %v1057_v14  ;;  %v3067_v13 = vld [vmem:[%s3997_s4] sm:$0xff]  }
 0x78e   :  { %3033 = vrot.lane.b32.xlu1 %v3032_v15, %s3372_s17 }
 0x800   :  { %v3034_v21 = vpop.permute.xlu1 %3033 }
 0x801   :  { %v3036_v22 = vunpack.i.h.bf16 %v3034_v21  ;;  %v3035_v23 = vunpack.i.l.bf16 %v3034_v21 }
 0x803   :  { %v1095_v26 = vsel %vm1094_vm4, %v1092_v24, %v3035_v23  ;;  %v1096_v27 = vsel %vm1094_vm4, %v1093_v25, %v3036_v22 }
 0x804   :  { %v1097_v28 = vpack.c.bf16 %v1096_v27, %v1095_v26 }
 0x806   :  { %2891 = vmatmul.mubr.msk.bf16.vlgmr.msra.gmra.mxu0 %vm153_vm0, %v1097_v28 }
 0x807   :  { %2906 = vmatprep.mubr.msk.bf16.mxu0 %vm3364_vm1, %v3363_v7  ;;  %2895 = vmatpush3.bf16.msra.mxu0 %v3062_v8 }
 0x808   :  { %2896 = vmatprep.subr.bf16.mxu0 %v3363_v7 }
 0x80b   :  { %2897 = vmatpush3.bf16.msra.mxu0 %v3063_v9 }
 0x80c   :  { %2898 = vmatprep.subr.bf16.mxu0 %v3363_v7 }
 0x80f   :  { %2899 = vmatpush3.bf16.msra.mxu0 %v3064_v10 }
 0x810   :  { %2900 = vmatprep.subr.bf16.mxu0 %v3363_v7 }
 0x813   :  { %2901 = vmatpush3.bf16.msra.mxu0 %v3065_v11 }
 0x814   :  { %2902 = vmatprep.subr.bf16.mxu0 %v3363_v7 }
 0x817   :  { %2903 = vmatpush3.bf16.msra.mxu0 %v3066_v12 }
 0x818   :  { %2904 = vmatprep.subr.bf16.mxu0 %v3363_v7 }
 0x81b   :  { %2905 = vmatpush3.bf16.msra.mxu0 %v3067_v13 }
 0x8c6   :  { %v1151_v32 = vpop.f32.mrf.mxu0 }
 0x8c7   :  { %v3682_v35 = vadd.f32 %v1151_v32, %v3483_v0  ;;  %v3058_v0 = vld [vmem:[%s3996_s3 + $0x14] ss:$8 sps:$4 sm:$0xff]  }
 0x8c8   :  { %v2892_v36 = vpop.f32.mrf.mxu0  ;;  %1225 = vmatprep.subr.bf16.mxu1 %v3058_v0 }
 0x8c9   :  { %v1161_v37 = vmul.f32 %v3682_v35, %v3682_v35  ;;  %1226 = vmatpush1.bf16.msra.mxu1 %v3056_v46 }
 0x8ca   :  { %v1154_v38 = vpop.f32.mrf.mxu0  ;;  %1227 = vmatprep.subr.bf16.mxu1 %v3061_v34 }
 0x8cb   :  { %v3687_v40 = vadd.f32 %v1154_v38, %v3485_v1  ;;  %v1163_v43 = vsel %vm153_vm0, %v1161_v37, 0.0  ;;  %v3059_v1 = vld [vmem:[%s3996_s3] ss:$8 sps:$4 sm:$0xff]  }
 0x8cc   :  { %1164 = vadd.xlane.f32.xlu0 %v1163_v43  ;;  %v2893_v44 = vpop.f32.mrf.mxu0 }
 0x8cd   :  { %v1162_v60 = vmul.f32 %v3687_v40, %v3687_v40  ;;  %1228 = vmatpush1.bf16.msra.mxu1 %v3059_v1 }
 0x8ce   :  { %2910 = vmatprep.subr.bf16.mxu1 %v3363_v7 }
 0x8cf   :  { %v1166_v45 = vsel %vm153_vm0, %v1162_v60, 0.0 }
 0x8d0   :  { %1167 = vadd.xlane.f32.xlu1 %v1166_v45 }
 0x955   :  { %v1165_v63 = vpop.xlane.xlu0 %1164 }
 0x956   :  { %v1169_v49 = vmul.f32 0.03125, %v1165_v63 }
 0x958   :  { %v1171_v50 = vadd.f32 1e-05, %v1169_v49 }
 0x959   :  { %v1168_v52 = vpop.xlane.xlu1 %1167 }
 0x95a   :  { %3120 = vrsqrt.f32 %v1171_v50  ;;  %v1170_v54 = vmul.f32 0.03125, %v1168_v52 }
 0x95c   :  { %v1172_v55 = vadd.f32 1e-05, %v1170_v54 }
 0x95e   :  { %3122 = vrsqrt.f32 %v1172_v55 }
 0x967   :  { %v3121_v57 = vpop.eup %3120 }
 0x968   :  { %v1175_v58 = vmul.f32 %v3121_v57, %v3682_v35 }
 0x96a   :  { %v1183_v2 = vmul.f32 %v2647_v61, %v1175_v58 }
 0x96b   :  { %v3123_v59 = vpop.eup %3122 }
 0x96c   :  { %v1176_v62 = vmul.f32 %v3123_v59, %v3687_v40 }
 0x96e   :  { %v1184_v4 = vmul.f32 %v2647_v61, %v1176_v62 }
 0x970   :  { %v1185_v6 = vpack.c.bf16 %v1184_v4, %v1183_v2  ;;  %v2662_v4 = vld [vmem:[#allocation5 + $0x1] ss:$0 sm:$0xff] }
 0x972   :  { %2652 = vmatmul.mubr.msk.bf16.vlgmr.msra.gmra.mxu1 %vm153_vm0, %v1185_v6 }
 0x973   :  { %2914 = vmatprep.mubr.msk.bf16.mxu1 %vm3364_vm1, %v3363_v7 }
 0xa32   :  { %v1247_v14 = vpop.f32.mrf.mxu1 }
 0xa33   :  { %1274 = vrot.lane.b32.xlu0 %v1247_v14, %s3366_s27  ;;  %v2653_v18 = vmul.f32 -1.442695, %v1247_v14 }
 0xa34   :  { %v1249_v15 = vpop.f32.mrf.mxu1 }
 0xa35   :  { %1276 = vrot.lane.b32.xlu1 %v1249_v15, %s3366_s27  ;;  %3124 = vpow2.f32 %v2653_v18 }
 0xa36   :  { %v1251_v16 = vpop.f32.mrf.mxu1 }
 0xa37   :  { %1278 = vrot.lane.b32.xlu0 %v1251_v16, %s3366_s27  ;;  %v2654_v53 = vmul.f32 -1.442695, %v1251_v16 }
 0xa38   :  { %v1253_v17 = vpop.f32.mrf.mxu1 }
 0xa39   :  { %1280 = vrot.lane.b32.xlu1 %v1253_v17, %s3366_s27  ;;  %3126 = vpow2.f32 %v2654_v53 }
 0xa42   :  { %v3125_v19 = vpop.eup %3124 }
 0xa43   :  { %v1262_v56 = vadd.f32 1.0, %v3125_v19 }
 0xa45   :  { %3128 = vrcp.f32 %v1262_v56 }
 0xa46   :  { %v3127_v31 = vpop.eup %3126 }
 0xa47   :  { %v1263_v20 = vadd.f32 1.0, %v3127_v31 }
 0xa49   :  { %3130 = vrcp.f32 %v1263_v20 }
 0xa52   :  { %v3129_v22 = vpop.eup %3128 }
 0xa53   :  { %v1268_v26 = vmul.f32 %v3129_v22, %v1247_v14 }
 0xa56   :  { %v3131_v24 = vpop.eup %3130 }
 0xa57   :  { %v1269_v27 = vmul.f32 %v3131_v24, %v1251_v16 }
 0xaa5   :  { %v1275_v21 = vpop.permute.xlu0 %1274 }
 0xaa7   :  { %v1277_v23 = vpop.permute.xlu1 %1276 }
 0xaa8   :  { %v1282_v25 = vsel %vm153_vm0, %v1275_v21, %v1277_v23 }
 0xaa9   :  { %v1279_v28 = vpop.permute.xlu0 %1278  ;;  %v1286_v37 = vmul.f32 %v1282_v25, %v1268_v26 }
 0xaab   :  { %v1281_v32 = vpop.permute.xlu1 %1280 }
 0xaac   :  { %v1283_v36 = vsel %vm153_vm0, %v1279_v28, %v1281_v32 }
 0xaad   :  { %v1287_v38 = vmul.f32 %v1283_v36, %v1269_v27 }
 0xaaf   :  { %v1288_v43 = vpack.c.bf16 %v1287_v38, %v1286_v37 }
 0xab1   :  { %2907 = vmatmul.mubr.msk.bf16.vlgmr.msra.gmra.mxu0 %vm1337_vm5, %v1288_v43 }
 0xb71   :  { %v1375_v44 = vpop.f32.mrf.mxu0 }
 0xb72   :  { %v3743_v60 = vadd.f32 %v1375_v44, %v3682_v35  ;;  %v3068_v35 = vld [vmem:[%s3994_s1 + $0x18] sm:$0xff]  }
 0xb73   :  { %v2908_v45 = vpop.f32.mrf.mxu0  ;;  %2911 = vmatpush3.bf16.msra.mxu1 %v3068_v35 }
 0xb74   :  { %v1386_v0 = vmul.f32 %v3743_v60, %v3743_v60  ;;  %2912 = vmatprep.subr.bf16.mxu1 %v3363_v7 }
 0xb75   :  { %v1378_v46 = vpop.f32.mrf.mxu0 }
 0xb76   :  { %v3748_v1 = vadd.f32 %v1378_v46, %v3687_v40  ;;  %v1388_v34 = vsel %vm153_vm0, %v1386_v0, 0.0  ;;  %v3069_v40 = vld [vmem:[%s3994_s1 + $0x10] sm:$0xff]  }
 0xb77   :  { %1389 = vadd.xlane.f32.xlu0 %v1388_v34  ;;  %v2909_v63 = vpop.f32.mrf.mxu0  ;;  %2913 = vmatpush3.bf16.msra.mxu1 %v3069_v40 }
 0xb78   :  { %v1387_v49 = vmul.f32 %v3748_v1, %v3748_v1 }
 0xb7a   :  { %v1391_v50 = vsel %vm153_vm0, %v1387_v49, 0.0 }
 0xb7b   :  { %1392 = vadd.xlane.f32.xlu1 %v1391_v50 }
 0xc00   :  { %v1390_v52 = vpop.xlane.xlu0 %1389 }
 0xc01   :  { %v1394_v54 = vmul.f32 0.03125, %v1390_v52 }
 0xc03   :  { %v1396_v55 = vadd.f32 1e-05, %v1394_v54 }
 0xc04   :  { %v1393_v57 = vpop.xlane.xlu1 %1392 }
 0xc05   :  { %3132 = vrsqrt.f32 %v1396_v55  ;;  %v1395_v58 = vmul.f32 0.03125, %v1393_v57 }
 0xc07   :  { %v1397_v59 = vadd.f32 1e-05, %v1395_v58 }
 0xc09   :  { %3134 = vrsqrt.f32 %v1397_v59 }
 0xc12   :  { %v3133_v61 = vpop.eup %3132 }
 0xc13   :  { %v1400_v62 = vmul.f32 %v3133_v61, %v3743_v60 }
 0xc15   :  { %v1408_v8 = vmul.f32 %v2662_v4, %v1400_v62 }
 0xc16   :  { %v3135_v2 = vpop.eup %3134 }
 0xc17   :  { %v1401_v6 = vmul.f32 %v3135_v2, %v3748_v1 }
 0xc19   :  { %v1409_v9 = vmul.f32 %v2662_v4, %v1401_v6 }
 0xc1b   :  { %v1410_v10 = vpack.c.bf16 %v1409_v9, %v1408_v8 }
 0xc1d   :  { %2915 = vmatmul.mubr.msk.bf16.vlgmr.msra.gmra.mxu1 %vm153_vm0, %v1410_v10 }
 0xcdd   :  { %v3764_v11 = vpop.f32.mrf.mxu1 }
 0xcde   :  { %v1488_v12 = vmul.f32 %v3764_v11, %v3518_v30  ;;  %v1486_v17 = vmul.f32 %v3764_v11, %v3542_v42 }
 0xcdf   :  { %v2916_v13 = vpop.f32.mrf.mxu1 }
 0xce0   :  { %1492 = vrot.lane.b32.xlu1 %v1488_v12, %s3368_s8 }
 0xce1   :  { %v3769_v14 = vpop.f32.mrf.mxu1 }
 0xce2   :  { %v1489_v15 = vmul.f32 %v3769_v14, %v3516_v29  ;;  %v1487_v30 = vmul.f32 %v3769_v14, %v3540_v41  ;;  %v1475_v56 = vmul.f32 %v3769_v14, %v3522_v33  ;;  %v1474_v29 = vmul.f32 %v3764_v11, %v3534_v39 }
 0xce3   :  { %v2917_v16 = vpop.f32.mrf.mxu1  ;;  %v1472_v33 = vmul.f32 %v3764_v11, %v3549_v48  ;;  %v1473_v21 = vmul.f32 %v3769_v14, %v3554_v51 }
 0xce4   :  { %1494 = vrot.lane.b32.xlu0 %v1489_v15, %s3368_s8 }
 0xd52   :  { %v1493_v18 = vpop.permute.xlu1 %1492 }
 0xd53   :  { %v1498_v53 = vadd.f32 %v1493_v18, %v1486_v17 }
 0xd55   :  { %1502 = vrot.lane.b32.xlu1 %v1498_v53, %s3367_s29 }
 0xd56   :  { %v1495_v19 = vpop.permute.xlu0 %1494 }
 0xd57   :  { %v1499_v31 = vadd.f32 %v1495_v19, %v1487_v30 }
 0xd59   :  { %1504 = vrot.lane.b32.xlu0 %v1499_v31, %s3367_s29  ;;  %1480 = vrot.lane.b32.xlu1 %v1475_v56, %s3369_s30 }
 0xd5d   :  { %1478 = vrot.lane.b32.xlu0 %v1474_v29, %s3369_s30 }
 0xdc7   :  { %v3786_v42 = vpop.permute.xlu1 %1502 }
 0xdcb   :  { %v3788_v20 = vpop.permute.xlu0 %1504  ;;  %v1481_v41 = vpop.permute.xlu1 %1480 }
 0xdcc   :  { %2918 = vmatprep.subr.msk.mxu1 %vm296_vm2, %v3788_v20  ;;  %v3804_v23 = vadd.f32 %v1481_v41, %v1473_v21 }
 0xdcd   :  { %2919 = vmatpush3.xpose.msk.msra.mxu1 %vm296_vm2, %v3788_v20 }
 0xdce   :  { %2920 = vmatprep.subr.msk.mxu1 %vm296_vm2, %v3786_v42 }
 0xdcf   :  { %v1479_v39 = vpop.permute.xlu0 %1478 }
 0xdd0   :  { %v3800_v22 = vadd.f32 %v1479_v39, %v1472_v33 }
 0xdd1   :  { %2921 = vmatpush3.xpose.msk.msra.mxu1 %vm296_vm2, %v3786_v42 }
 0xdd2   :  { %2922 = vmatprep.mubr.msk.f32.mxu1 %vm296_vm2, %v3800_v22 }
 0xdd4   :  { %2923 = vmatmul.mubr.msk.f32.vlgmr.msra.gmra.mxu1 %vm296_vm2, %v3804_v23 }
 0xe94   :  { %v2924_v24 = vpop.f32.mrf.mxu1 }
 0xe95   :  { %v1588_v48 = vadd.f32 %v2924_v24, %v3600_v3 }
 0xe96   :  { %v1582_v25 = vpop.f32.mrf.mxu1 }
 0xe97   :  { %v1583_v26 = vadd.f32 %v1582_v25, %v3602_v5  ;;  %v1594_v51 = vsel %vm382_vm3, %v1588_v48, -inf }
 0xe98   :  { %1595 = vmax.xlane.f32.xlu1 %v1594_v51 }
 0xe99   :  { %v1591_v27 = vsel %vm382_vm3, %v1583_v26, -inf }
 0xe9a   :  { %1592 = vmax.xlane.f32.xlu0 %v1591_v27 }
 0xea9   :  { %1617 = vrot.lane.b32.xlu1 %v3769_v14, %s3366_s27 }
 0xead   :  { %1702 = vrot.lane.b32.xlu1 %v3800_v22, %s3371_s14 }
 0xeb1   :  { %1894 = vrot.lane.b32.xlu1 %v1499_v31, %s3370_s13 }
 0xeb5   :  { %1892 = vrot.lane.b32.xlu1 %v1498_v53, %s3370_s13 }
 0xeb9   :  { %1890 = vrot.lane.b32.xlu1 %v3804_v23, %s3368_s8 }
 0xf21   :  { %v1596_v28 = vpop.xlane.xlu1 %1595 }
 0xf22   :  { %v1598_v32 = vsub.f32 %v1588_v48, %v1596_v28 }
 0xf23   :  { %v1593_v36 = vpop.xlane.xlu0 %1592 }
 0xf24   :  { %v1601_v37 = vmul.f32 1.442695, %v1598_v32  ;;  %v1597_v38 = vsub.f32 %v1583_v26, %v1593_v36 }
 0xf25   :  { %v1618_v43 = vpop.permute.xlu1 %1617 }
 0xf26   :  { %3136 = vpow2.f32 %v1601_v37  ;;  %v1599_v44 = vmul.f32 1.442695, %v1597_v38  ;;  %2925 = vmatprep.subr.mxu1 %v1618_v43  ;;  %2939 = vmatprep.subr.mxu0 %v1618_v43 }
 0xf27   :  { %2926 = vmatpush3.msra.mxu1 %v1618_v43  ;;  %2940 = vmatpush3.msra.mxu0 %v1618_v43 }
 0xf28   :  { %3138 = vpow2.f32 %v1599_v44 }
 0xf29   :  { %v1703_v52 = vpop.permute.xlu1 %1702 }
 0xf2d   :  { %v3839_v58 = vpop.permute.xlu1 %1894 }
 0xf31   :  { %v3846_v61 = vpop.permute.xlu1 %1892 }
 0xf33   :  { %v3137_v45 = vpop.eup %3136 }
 0xf34   :  { %v1606_v0 = vsel %vm382_vm3, %v3137_v45, 0.0 }
 0xf35   :  { %v3139_v46 = vpop.eup %3138  ;;  %1607 = vadd.xlane.f32.xlu0 %v1606_v0  ;;  %v1891_v62 = vpop.permute.xlu1 %1890 }
 0xf36   :  { %v1603_v34 = vsel %vm382_vm3, %v3139_v46, 0.0 }
 0xf39   :  { %1604 = vadd.xlane.f32.xlu0 %v1603_v34 }
 0xf4f   :  { %1615 = vrot.lane.b32.xlu0 %v3764_v11, %s3366_s27 }
 0xf53   :  { %1704 = vrot.lane.b32.xlu0 %v3804_v23, %s3371_s14 }
 0xf57   :  { %1888 = vrot.lane.b32.xlu0 %v3800_v22, %s3368_s8 }
 0xfbe   :  { %v1608_v63 = vpop.xlane.xlu0 %1607 }
 0xfbf   :  { %3140 = vrcp.f32 %v1608_v63 }
 0xfc2   :  { %v1605_v49 = vpop.xlane.xlu0 %1604 }
 0xfc3   :  { %3142 = vrcp.f32 %v1605_v49 }
 0xfc6   :  { %v1616_v50 = vpop.permute.xlu0 %1615 }
 0xfc7   :  { %2927 = vmatprep.subr.mxu1 %v1616_v50  ;;  %2941 = vmatprep.subr.mxu0 %v1616_v50 }
 0xfc8   :  { %2928 = vmatpush3.msra.mxu1 %v1616_v50  ;;  %2942 = vmatpush3.msra.mxu0 %v1616_v50 }
 0xfc9   :  { %2932 = vmatprep.subr.msk.mxu1 %vm296_vm2, %v3788_v20 }
 0xfca   :  { %v1705_v57 = vpop.permute.xlu0 %1704 }
 0xfcc   :  { %v3141_v35 = vpop.eup %3140 }
 0xfcd   :  { %v1612_v55 = vmul.f32 %v3141_v35, %v3137_v45 }
 0xfce   :  { %v1889_v59 = vpop.permute.xlu0 %1888 }
 0xfd0   :  { %v3143_v40 = vpop.eup %3142 }
 0xfd1   :  { %v1611_v54 = vmul.f32 %v3143_v40, %v3139_v46 }
 0xfd3   :  { %2929 = vmatprep.mubr.msk.f32.mxu1 %vm382_vm3, %v1611_v54 }
 0xfd4   :  { %2930 = vmatmul.mubr.msk.f32.vlgmr.msra.gmra.mxu1 %vm382_vm3, %v1612_v55 }
 0xfd5   :  { %2933 = vmatpush3.xpose.msk.msra.mxu1 %vm296_vm2, %v3788_v20  ;;  %2936 = vmatprep.mubr.msk.f32.mxu1 %vm296_vm2, %v1703_v52 }
 0xfd6   :  { %2934 = vmatprep.subr.msk.mxu1 %vm296_vm2, %v3786_v42 }
 0xfd9   :  { %2935 = vmatpush3.xpose.msk.msra.mxu1 %vm296_vm2, %v3786_v42 }
 0xfda   :  { %2946 = vmatprep.subr.msk.mxu1 %vm296_vm2, %v3839_v58 }
 0xfdc   :  { %2937 = vmatmul.mubr.msk.f32.vlgmr.msra.gmra.mxu1 %vm296_vm2, %v1705_v57 }
 0xfdd   :  { %2947 = vmatpush3.xpose.msk.msra.mxu1 %vm296_vm2, %v3839_v58  ;;  %2950 = vmatprep.mubr.msk.f32.mxu1 %vm296_vm2, %v1889_v59 }
 0xfde   :  { %2948 = vmatprep.subr.msk.mxu1 %vm296_vm2, %v3846_v61 }
 0xfe1   :  { %2949 = vmatpush3.xpose.msk.msra.mxu1 %vm296_vm2, %v3846_v61 }
 0xfe4   :  { %2951 = vmatmul.mubr.msk.f32.vlgmr.msra.gmra.mxu1 %vm296_vm2, %v1891_v62 }
0x1094   :  { %v3856_v2 = vpop.f32.mrf.mxu1 }
0x1096   :  { %v3858_v4 = vpop.f32.mrf.mxu1 }
0x109c   :  { %v2938_v6 = vpop.f32.mrf.mxu1 }
0x109d   :  { %v1782_v8 = vadd.f32 %v2938_v6, %v3600_v3  ;;  %v3181_v6 = vld [vmem:[#allocation13] sm:$0xff] }
0x109e   :  { %v1776_v9 = vpop.f32.mrf.mxu1 }
0x109f   :  { %v1777_v10 = vadd.f32 %v1776_v9, %v3602_v5  ;;  %v1788_v12 = vsel %vm382_vm3, %v1782_v8, -inf }
0x10a0   :  { %1789 = vmax.xlane.f32.xlu1 %v1788_v12 }
0x10a1   :  { %v1785_v13 = vsel %vm382_vm3, %v1777_v10, -inf }
0x10a2   :  { %1786 = vmax.xlane.f32.xlu0 %v1785_v13 }
0x10a4   :  { %v2952_v15 = vpop.f32.mrf.mxu1 }
0x10a5   :  { %v1976_v18 = vadd.f32 %v2952_v15, %v3600_v3 }
0x10a6   :  { %v1970_v16 = vpop.f32.mrf.mxu1 }
0x10a7   :  { %v1971_v17 = vadd.f32 %v1970_v16, %v3602_v5  ;;  %v1982_v30 = vsel %vm382_vm3, %v1976_v18, -inf }
0x10a9   :  { %v1979_v53 = vsel %vm382_vm3, %v1971_v17, -inf }
0x10aa   :  { %1980 = vmax.xlane.f32.xlu0 %v1979_v53 }
0x10ae   :  { %1983 = vmax.xlane.f32.xlu0 %v1982_v30 }
0x10b1   :  { %2003 = vrot.lane.b32.xlu1 %v3769_v14, %s3372_s17 }
0x1129   :  { %v1790_v19 = vpop.xlane.xlu1 %1789 }
0x112a   :  { %v1792_v31 = vsub.f32 %v1782_v8, %v1790_v19 }
0x112b   :  { %v1787_v56 = vpop.xlane.xlu0 %1786 }
0x112c   :  { %v1795_v29 = vmul.f32 1.442695, %v1792_v31  ;;  %v1791_v42 = vsub.f32 %v1777_v10, %v1787_v56 }
0x112d   :  { %v2004_v20 = vpop.permute.xlu1 %2003 }
0x112e   :  { %3144 = vpow2.f32 %v1795_v29  ;;  %v1793_v33 = vmul.f32 1.442695, %v1791_v42  ;;  %2953 = vmatprep.subr.mxu0 %v2004_v20  ;;  %2967 = vmatprep.subr.mxu1 %v2004_v20 }
0x112f   :  { %2968 = vmatpush3.msra.mxu1 %v2004_v20 }
0x1130   :  { %3146 = vpow2.f32 %v1793_v33 }
0x1133   :  { %v1981_v3 = vpop.xlane.xlu0 %1980 }
0x1134   :  { %v1985_v51 = vsub.f32 %v1971_v17, %v1981_v3  ;;  %v3070_v3 = vld [vmem:[%s3995_s2 + $0x18] sm:$0xff]  }
0x1136   :  { %v1987_v27 = vmul.f32 1.442695, %v1985_v51 }
0x1137   :  { %v1984_v5 = vpop.xlane.xlu0 %1983 }
0x1138   :  { %v1986_v41 = vsub.f32 %v1976_v18, %v1984_v5  ;;  %v3071_v5 = vld [vmem:[%s3995_s2 + $0x10] sm:$0xff]  }
0x113a   :  { %v1989_v39 = vmul.f32 1.442695, %v1986_v41 }
0x113b   :  { %v3145_v21 = vpop.eup %3144 }
0x113c   :  { %3148 = vpow2.f32 %v1989_v39  ;;  %v1800_v14 = vsel %vm382_vm3, %v3145_v21, 0.0 }
0x113d   :  { %v3147_v24 = vpop.eup %3146  ;;  %1801 = vadd.xlane.f32.xlu0 %v1800_v14  ;;  %3150 = vpow2.f32 %v1987_v27 }
0x113e   :  { %v1797_v48 = vsel %vm382_vm3, %v3147_v24, 0.0 }
0x113f   :  { %1798 = vadd.xlane.f32.xlu1 %v1797_v48 }
0x1149   :  { %v3149_v25 = vpop.eup %3148 }
0x114a   :  { %v1994_v26 = vsel %vm382_vm3, %v3149_v25, 0.0  ;;  %v3151_v28 = vpop.eup %3150 }
0x114b   :  { %1995 = vadd.xlane.f32.xlu0 %v1994_v26  ;;  %v1991_v32 = vsel %vm382_vm3, %v3151_v28, 0.0 }
0x1150   :  { %2088 = vrot.lane.b32.xlu1 %v3800_v22, %s3373_s0 }
0x1161   :  { %2001 = vrot.lane.b32.xlu0 %v3764_v11, %s3372_s17 }
0x1174   :  { %1992 = vadd.xlane.f32.xlu1 %v1991_v32 }
0x1185   :  { %2090 = vrot.lane.b32.xlu1 %v3804_v23, %s3373_s0 }
0x11c6   :  { %v1802_v36 = vpop.xlane.xlu0 %1801 }
0x11c7   :  { %3152 = vrcp.f32 %v1802_v36 }
0x11c8   :  { %v1799_v37 = vpop.xlane.xlu1 %1798 }
0x11c9   :  { %3154 = vrcp.f32 %v1799_v37 }
0x11cc   :  { %v2089_v11 = vpop.permute.xlu1 %2088 }
0x11d4   :  { %v1996_v38 = vpop.xlane.xlu0 %1995  ;;  %v3153_v43 = vpop.eup %3152 }
0x11d5   :  { %v1806_v0 = vmul.f32 %v3153_v43, %v3145_v21  ;;  %3156 = vrcp.f32 %v1996_v38 }
0x11d6   :  { %v3155_v22 = vpop.eup %3154 }
0x11d7   :  { %v1805_v44 = vmul.f32 %v3155_v22, %v3147_v24 }
0x11d8   :  { %v2002_v45 = vpop.permute.xlu0 %2001 }
0x11d9   :  { %2943 = vmatprep.mubr.msk.f32.mxu0 %vm382_vm3, %v1805_v44  ;;  %2969 = vmatprep.subr.mxu1 %v2002_v45 }
0x11da   :  { %2944 = vmatmul.mubr.msk.f32.vlgmr.msra.gmra.mxu0 %vm382_vm3, %v1806_v0  ;;  %2970 = vmatpush3.msra.mxu1 %v2002_v45 }
0x11db   :  { %2954 = vmatpush3.msra.mxu0 %v2004_v20  ;;  %2974 = vmatprep.subr.bf16.mxu1 %v3363_v7 }
0x11dc   :  { %2955 = vmatprep.subr.mxu0 %v2002_v45 }
0x11dd   :  { %2956 = vmatpush3.msra.mxu0 %v2002_v45 }
0x11de   :  { %2960 = vmatprep.subr.msk.mxu0 %vm296_vm2, %v3839_v58 }
0x11e2   :  { %v3157_v46 = vpop.eup %3156 }
0x11e3   :  { %v2000_v49 = vmul.f32 %v3157_v46, %v3149_v25 }
0x11fd   :  { %v1993_v23 = vpop.xlane.xlu1 %1992 }
0x11fe   :  { %3158 = vrcp.f32 %v1993_v23 }
0x1201   :  { %v2091_v50 = vpop.permute.xlu1 %2090 }
0x120b   :  { %v3159_v34 = vpop.eup %3158 }
0x120c   :  { %v1999_v63 = vmul.f32 %v3159_v34, %v3151_v28 }
0x120e   :  { %2957 = vmatprep.mubr.msk.f32.mxu0 %vm382_vm3, %v1999_v63 }
0x120f   :  { %2958 = vmatmul.mubr.msk.f32.vlgmr.msra.gmra.mxu0 %vm382_vm3, %v2000_v49 }
0x1210   :  { %2961 = vmatpush3.xpose.msk.msra.mxu0 %vm296_vm2, %v3839_v58  ;;  %2964 = vmatprep.mubr.msk.f32.mxu0 %vm296_vm2, %v2089_v11  ;;  %v3180_v58 = vld [vmem:[#allocation13 + $0x8] sm:$0xff] }
0x1211   :  { %2962 = vmatprep.subr.msk.mxu0 %vm296_vm2, %v3846_v61 }
0x1214   :  { %2963 = vmatpush3.xpose.msk.msra.mxu0 %vm296_vm2, %v3846_v61 }
0x1217   :  { %2965 = vmatmul.mubr.msk.f32.vlgmr.msra.gmra.mxu0 %vm296_vm2, %v2091_v50 }
0x1218   :  { %2455 = vmatprep.mubr.bf16.mxu0 %v3374_v47 }
0x129a   :  { %v2945_v35 = vpop.f32.mrf.mxu0 }
0x129c   :  { %v1879_v40 = vpop.f32.mrf.mxu0 }
0x129d   :  { %v3037_v10 = vpack.i.bf16 %v2945_v35, %v1879_v40  ;;  %v3072_v35 = vld [vmem:[%s3996_s3 + $0x30] ss:$8 sps:$4 sm:$0xff]   ;;  %v3077_v40 = vld [vmem:[%s3996_s3 + $0x24] ss:$8 sps:$4 sm:$0xff]  }
0x12cf   :  { %v2959_v52 = vpop.f32.mrf.mxu0 }
0x12d1   :  { %v2079_v54 = vpop.f32.mrf.mxu0 }
0x12d2   :  { %v3042_v55 = vpack.i.bf16 %v2959_v52, %v2079_v54 }
0x12d7   :  { %v2966_v57 = vpop.f32.mrf.mxu0 }
0x12d8   :  { %v2168_v59 = vadd.f32 %v3180_v58, %v2966_v57 }
0x12d9   :  { %v2162_v62 = vpop.f32.mrf.mxu0 }
0x12da   :  { %v2163_v8 = vadd.f32 %v3181_v6, %v2162_v62  ;;  %v2174_v9 = vsel %vm382_vm3, %v2168_v59, -inf }
0x12db   :  { %2175 = vmax.xlane.f32.xlu1 %v2174_v9  ;;  %v2701_v9 = vld [vmem:[#allocation7 + $0x1] ss:$0 sm:$0xff] }
0x12dc   :  { %v2171_v61 = vsel %vm382_vm3, %v2163_v8, -inf }
0x12dd   :  { %2172 = vmax.xlane.f32.xlu0 %v2171_v61 }
0x12ec   :  { %3038 = vrot.lane.b32.xlu1 %v3037_v10, %s3358_s16 }
0x1364   :  { %v2176_v47 = vpop.xlane.xlu1 %2175 }
0x1365   :  { %v2178_v12 = vsub.f32 %v2168_v59, %v2176_v47 }
0x1366   :  { %v2173_v13 = vpop.xlane.xlu0 %2172 }
0x1367   :  { %v2177_v15 = vsub.f32 %v2163_v8, %v2173_v13  ;;  %v2181_v16 = vmul.f32 1.442695, %v2178_v12  ;;  %v3078_v13 = vld [vmem:[%s3997_s4 + $0x58] sm:$0xff]  }
0x1368   :  { %v3039_v14 = vpop.permute.xlu1 %3038 }
0x1369   :  { %v2179_v17 = vmul.f32 1.442695, %v2177_v15  ;;  %v3041_v48 = vunpack.i.h.bf16 %v3039_v14  ;;  %v3040_v25 = vunpack.i.l.bf16 %v3039_v14  ;;  %v3079_v15 = vld [vmem:[%s3997_s4 + $0x50] sm:$0xff]  }
0x136b   :  { %3160 = vpow2.f32 %v2179_v17  ;;  %v2299_v28 = vsel %vm296_vm2, %v3856_v2, %v3041_v48  ;;  %v2298_v32 = vsel %vm296_vm2, %v3858_v4, %v3040_v25  ;;  %v3081_v17 = vld [vmem:[%s3997_s4 + $0x40] sm:$0xff]  }
0x136c   :  { %3162 = vpow2.f32 %v2181_v16  ;;  %v3080_v16 = vld [vmem:[%s3997_s4 + $0x48] sm:$0xff]  }
0x1378   :  { %v3161_v18 = vpop.eup %3160 }
0x1379   :  { %v2183_v53 = vsel %vm382_vm3, %v3161_v18, 0.0  ;;  %v3163_v30 = vpop.eup %3162 }
0x137a   :  { %2184 = vadd.xlane.f32.xlu0 %v2183_v53  ;;  %v2186_v19 = vsel %vm382_vm3, %v3163_v30, 0.0  ;;  %v3083_v53 = vld [vmem:[%s3997_s4 + $0x30] sm:$0xff]  }
0x137e   :  { %2187 = vadd.xlane.f32.xlu0 %v2186_v19 }
0x1394   :  { %3043 = vrot.lane.b32.xlu0 %v3042_v55, %s3353_s24 }
0x1403   :  { %v2185_v31 = vpop.xlane.xlu0 %2184 }
0x1404   :  { %3164 = vrcp.f32 %v2185_v31 }
0x1407   :  { %v2188_v56 = vpop.xlane.xlu0 %2187 }
0x1408   :  { %3166 = vrcp.f32 %v2188_v56 }
0x140b   :  { %v3044_v24 = vpop.permute.xlu0 %3043 }
0x140c   :  { %v3046_v26 = vunpack.i.h.bf16 %v3044_v24  ;;  %v3045_v51 = vunpack.i.l.bf16 %v3044_v24 }
0x140e   :  { %v2301_v38 = vsel %vm382_vm3, %v2299_v28, %v3046_v26  ;;  %v2300_v43 = vsel %vm382_vm3, %v2298_v32, %v3045_v51 }
0x1411   :  { %v3165_v29 = vpop.eup %3164 }
0x1412   :  { %v2191_v42 = vmul.f32 %v3165_v29, %v3161_v18  ;;  %v3082_v18 = vld [vmem:[%s3997_s4 + $0x38] sm:$0xff]   ;;  %s3375_s4 = smov [#allocation14]  }
0x1414   :  { %2971 = vmatprep.mubr.msk.f32.mxu1 %vm382_vm3, %v2191_v42 }
0x1415   :  { %v3167_v20 = vpop.eup %3166 }
0x1416   :  { %v2192_v33 = vmul.f32 %v3167_v20, %v3163_v30 }
0x1418   :  { %2972 = vmatmul.mubr.msk.f32.vlgmr.msra.gmra.mxu1 %vm382_vm3, %v2192_v33 }
0x1419   :  { %2978 = vmatprep.mubr.msk.bf16.mxu1 %vm3364_vm1, %v3363_v7  ;;  %2975 = vmatpush3.bf16.msra.mxu1 %v3070_v3 }
0x141a   :  { %2976 = vmatprep.subr.bf16.mxu1 %v3363_v7 }
0x141d   :  { %2977 = vmatpush3.bf16.msra.mxu1 %v3071_v5 }
0x141e   :  { %2982 = vmatprep.subr.bf16.mxu1 %v3363_v7 }
0x14d8   :  { %v2973_v41 = vpop.f32.mrf.mxu1 }
0x14da   :  { %v2265_v39 = vpop.f32.mrf.mxu1 }
0x14db   :  { %v3047_v21 = vpack.i.bf16 %v2973_v41, %v2265_v39 }
0x14dd   :  { %3048 = vrot.lane.b32.xlu1 %v3047_v21, %s3372_s17 }
0x154f   :  { %v3049_v27 = vpop.permute.xlu1 %3048 }
0x1550   :  { %v3051_v36 = vunpack.i.h.bf16 %v3049_v27  ;;  %v3050_v37 = vunpack.i.l.bf16 %v3049_v27 }
0x1552   :  { %v2302_v22 = vsel %vm1094_vm4, %v2300_v43, %v3050_v37  ;;  %v2303_v44 = vsel %vm1094_vm4, %v2301_v38, %v3051_v36 }
0x1553   :  { %v2304_v45 = vpack.c.bf16 %v2303_v44, %v2302_v22 }
0x1555   :  { %2979 = vmatmul.mubr.msk.bf16.vlgmr.msra.gmra.mxu1 %vm153_vm0, %v2304_v45 }
0x1556   :  { %2994 = vmatprep.mubr.msk.bf16.mxu1 %vm3364_vm1, %v3363_v7  ;;  %2983 = vmatpush3.bf16.msra.mxu1 %v3078_v13 }
0x1557   :  { %2984 = vmatprep.subr.bf16.mxu1 %v3363_v7 }
0x155a   :  { %2985 = vmatpush3.bf16.msra.mxu1 %v3079_v15 }
0x155b   :  { %2986 = vmatprep.subr.bf16.mxu1 %v3363_v7 }
0x155e   :  { %2987 = vmatpush3.bf16.msra.mxu1 %v3080_v16 }
0x155f   :  { %2988 = vmatprep.subr.bf16.mxu1 %v3363_v7 }
0x1562   :  { %2989 = vmatpush3.bf16.msra.mxu1 %v3081_v17 }
0x1563   :  { %2990 = vmatprep.subr.bf16.mxu1 %v3363_v7 }
0x1566   :  { %2991 = vmatpush3.bf16.msra.mxu1 %v3082_v18 }
0x1567   :  { %2992 = vmatprep.subr.bf16.mxu1 %v3363_v7 }
0x156a   :  { %2993 = vmatpush3.bf16.msra.mxu1 %v3083_v53 }
0x1615   :  { %v2359_v2 = vpop.f32.mrf.mxu1 }
0x1616   :  { %v3927_v0 = vadd.f32 %v2359_v2, %v3743_v60  ;;  %v3074_v60 = vld [vmem:[%s3996_s3 + $0x34] ss:$8 sps:$4 sm:$0xff]  }
0x1617   :  { %v2980_v4 = vpop.f32.mrf.mxu1  ;;  %2435 = vmatprep.subr.bf16.mxu0 %v3074_v60 }
0x1618   :  { %v2370_v11 = vmul.f32 %v3927_v0, %v3927_v0  ;;  %2436 = vmatpush1.bf16.msra.mxu0 %v3072_v35 }
0x1619   :  { %v2362_v23 = vpop.f32.mrf.mxu1  ;;  %2437 = vmatprep.subr.bf16.mxu0 %v3077_v40 }
0x161a   :  { %v3932_v46 = vadd.f32 %v2362_v23, %v3748_v1  ;;  %v2372_v34 = vsel %vm153_vm0, %v2370_v11, 0.0  ;;  %v3075_v1 = vld [vmem:[%s3996_s3 + $0x20] ss:$8 sps:$4 sm:$0xff]  }
0x161b   :  { %2373 = vadd.xlane.f32.xlu1 %v2372_v34  ;;  %v2981_v63 = vpop.f32.mrf.mxu1 }
0x161c   :  { %v2371_v49 = vmul.f32 %v3932_v46, %v3932_v46  ;;  %2438 = vmatpush1.bf16.msra.mxu0 %v3075_v1 }
0x161e   :  { %v2375_v50 = vsel %vm153_vm0, %v2371_v49, 0.0 }
0x161f   :  { %2376 = vadd.xlane.f32.xlu0 %v2375_v50 }
0x16a4   :  { %v2374_v52 = vpop.xlane.xlu1 %2373 }
0x16a5   :  { %v2378_v54 = vmul.f32 0.03125, %v2374_v52 }
0x16a7   :  { %v2380_v55 = vadd.f32 1e-05, %v2378_v54 }
0x16a8   :  { %v2377_v57 = vpop.xlane.xlu0 %2376 }
0x16a9   :  { %3168 = vrsqrt.f32 %v2380_v55  ;;  %v2379_v58 = vmul.f32 0.03125, %v2377_v57 }
0x16ab   :  { %v2381_v59 = vadd.f32 1e-05, %v2379_v58 }
0x16ad   :  { %3170 = vrsqrt.f32 %v2381_v59 }
0x16b6   :  { %v3169_v62 = vpop.eup %3168 }
0x16b7   :  { %v2384_v6 = vmul.f32 %v3169_v62, %v3927_v0 }
0x16b9   :  { %v2392_v10 = vmul.f32 %v2701_v9, %v2384_v6 }
0x16ba   :  { %v3171_v8 = vpop.eup %3170 }
0x16bb   :  { %v2385_v61 = vmul.f32 %v3171_v8, %v3932_v46 }
0x16bd   :  { %v2393_v47 = vmul.f32 %v2701_v9, %v2385_v61 }
0x16bf   :  { %v2394_v12 = vpack.c.bf16 %v2393_v47, %v2392_v10 }
0x16c1   :  { %2710 = vmatmul.mubr.msk.bf16.vlgmr.msra.gmra.mxu0 %vm153_vm0, %v2394_v12 }
0x1781   :  { %v2457_v30 = vpop.f32.mrf.mxu0 }
0x1782   :  { %2484 = vrot.lane.b32.xlu0 %v2457_v30, %s3366_s27  ;;  %v2711_v29 = vmul.f32 -1.442695, %v2457_v30 }
0x1783   :  { %v2459_v19 = vpop.f32.mrf.mxu0 }
0x1784   :  { %2486 = vrot.lane.b32.xlu1 %v2459_v19, %s3366_s27  ;;  %3172 = vpow2.f32 %v2711_v29 }
0x1785   :  { %v2461_v31 = vpop.f32.mrf.mxu0 }
0x1786   :  { %v2712_v42 = vmul.f32 -1.442695, %v2461_v31 }
0x1787   :  { %v2463_v56 = vpop.f32.mrf.mxu0 }
0x1788   :  { %2488 = vrot.lane.b32.xlu1 %v2461_v31, %s3366_s27  ;;  %2490 = vrot.lane.b32.xlu0 %v2463_v56, %s3366_s27  ;;  %3174 = vpow2.f32 %v2712_v42  ;;  %s2601_s27 = sshll.u32 %s3375_s4, 4  ;;  %s2602_s27 = int_to_ptr.vmem [resolvable:$true] %s2601_s27 }
0x1789   :  { %s3322_s7 = scalar_lea.vmem %s2602_s27, 256  ;;  %p3327_p8 = scmp.lt.s32.totalorder %s2602_s27, %s2602_s27 }
0x178a   :  { %p3323_p7 = scmp.ne.s32.totalorder %s2602_s27, %s3322_s7  ;;  %p3328_p9 = scmp.lt.s32.totalorder %s3322_s7, %s3322_s7 }
0x178c   :  { %p3329_p10 = por %p3328_p9, %p3327_p8 }
0x178e   :  { %p3330_p11 = pnand %p3329_p10, %p3323_p7 }
0x1791   :  { %v3173_v7 = vpop.eup %3172 }
0x1792   :  { %v2472_v33 = vadd.f32 1.0, %v3173_v7 }
0x1794   :  { %3176 = vrcp.f32 %v2472_v33 }
0x1795   :  { %v3175_v20 = vpop.eup %3174 }
0x1796   :  { %v2473_v3 = vadd.f32 1.0, %v3175_v20 }
0x1798   :  { %3178 = vrcp.f32 %v2473_v3 }
0x17a1   :  { %v3177_v5 = vpop.eup %3176 }
0x17a2   :  { %v2478_v24 = vmul.f32 %v3177_v5, %v2457_v30 }
0x17a5   :  { %v3179_v21 = vpop.eup %3178 }
0x17a6   :  { %v2479_v48 = vmul.f32 %v3179_v21, %v2461_v31 }
0x17f4   :  { %v2485_v41 = vpop.permute.xlu0 %2484 }
0x17f6   :  { %v2487_v39 = vpop.permute.xlu1 %2486 }
0x17f7   :  { %v2492_v14 = vsel %vm153_vm0, %v2485_v41, %v2487_v39 }
0x17f8   :  { %v2496_v27 = vmul.f32 %v2492_v14, %v2478_v24 }
0x17fa   :  { %v2489_v25 = vpop.permute.xlu1 %2488  ;;  %v2491_v26 = vpop.permute.xlu0 %2490 }
0x17fb   :  { %v2493_v51 = vsel %vm153_vm0, %v2489_v25, %v2491_v26 }
0x17fc   :  { %v2497_v28 = vmul.f32 %v2493_v51, %v2479_v48 }
0x17fe   :  { %v2498_v32 = vpack.c.bf16 %v2497_v28, %v2496_v27 }
0x1800   :  { %2995 = vmatmul.mubr.msk.bf16.vlgmr.msra.gmra.mxu1 %vm1337_vm5, %v2498_v32 }
0x18c0   :  { %v2585_v36 = vpop.f32.mrf.mxu1 }
0x18c1   :  { %v2592_v37 = vadd.f32 %v2585_v36, %v3927_v0 }
0x18c2   :  { %v2996_v38 = vpop.f32.mrf.mxu1 }
0x18c3   :  { %2594 = vst.msk [vmem:[#allocation14] sm:$0xff] %vm153_vm0, %v2592_v37 }
0x18c4   :  { %v2588_v43 = vpop.f32.mrf.mxu1 }
0x18c5   :  { %v2593_v22 = vadd.f32 %v2588_v43, %v3932_v46 }
0x18c6   :  { %v2997_v44 = vpop.f32.mrf.mxu1 }
0x18c7   :  { %2595 = vst.msk [vmem:[#allocation14 + $0x8] sm:$0xff] %vm153_vm0, %v2593_v22 }
0x18c8   :  { %3333 = shalt.err (!%p3330_p11)
}
0x18c9   :  { %2607 = dma.vmem_to_hbm [thread:$0]  %s2602_s27, 256, %s4005_s12, [#allocation4], %s3357_s15, %s3357_s15, %s3358_s16  }
0x18ca   :  { %3350 = dma.done.wait [#allocation4], 256  }
0x18cb   :  { %3351 = vsyncadd [#allocation4], 4294967040 }
0x18cc   :  { %2611 = vsyncpa [#allocation3], 1 }
0x18cd   :  { %2612 = vsyncpa [#allocation6], 1 }
0x18ce   :  { %2613 = vsyncpa [#allocation9], 1 }
0x18cf   :  { %2614 = vsyncpa [#allocation12], 1 }
0x18d0   :  { %2615 = vsyncpa [#allocation4], 1 }

</bundles_post_ra>
